<compile_context>
chip_gen: v6e
topology: v6e:2x2x1
jax: 0.10.0
libtpu: 0.0.40
codegen_flags: <defaults>
</compile_context>

<pallas_src>
import functools

import jax
import jax.numpy as jnp
from jax.experimental import pallas as pl
from jax.experimental.pallas import tpu as pltpu


# ------------------------------ fused kernel --------------------------------

def fused_gin_jk_kernel(adji_ref, x_ref, w1_ref, w2_ref, vec_ref, pool_ref,
                        hw1_ref, hb1_ref, hw2_ref, hb2_ref,
                        out_ref,
                        h_ref, agg_ref, zacc_ref,
                        *, num_layers, tile_k, matmul_dtype):
    """Entire GIN0WithJK forward; grid = (layer, source-node K tile).

    adji_ref : (N, tk)    current column slab of (A + I), streamed (mem-bound term)
    x_ref    : (N, H)     node features zero-padded to hidden width (resident)
    w1_ref   : (L, H, H)  first GIN-MLP weight per layer (layer-0 rows zero-padded)
    w2_ref   : (L, H, H)  second GIN-MLP weight per layer
    vec_ref  : (L, 4, H)  packed [b1, b2, bn_scale, bn_shift] per layer (f32)
    pool_ref : (G, N)     global_mean_pool matrix (1/|V_g| where batch == g)
    hw1_ref  : (L, H, H)  head lin1 weight reshaped from (L*H, H) (JK 'cat' fold)
    hb1_ref  : (1, H)  hw2_ref: (H, C)  hb2_ref: (1, C)
    out_ref  : (G, C)     log-probabilities (written on the final grid step)
    h_ref    : (N, H)     resident activation, stored in matmul dtype
    agg_ref  : (N, H) f32 (A+I) @ h accumulator across K tiles
    zacc_ref : (G, H) f32 head-lin1 accumulator (JK 'cat' folded)
    """
    l = pl.program_id(0)
    k = pl.program_id(1)
    nk = pl.num_programs(1)

    def mm(a, b):
        # MXU matmul; optionally bf16 operands, always f32 accumulation.
        return jnp.dot(a.astype(matmul_dtype), b.astype(matmul_dtype),
                       preferred_element_type=jnp.float32)

    # first grid step: load initial (padded) node features into the resident h slab
    @pl.when(jnp.logical_and(l == 0, k == 0))
    def _():
        h_ref[...] = x_ref[...].astype(h_ref.dtype)
        zacc_ref[...] = jnp.zeros_like(zacc_ref)

    # start of each layer's reduction over source-node tiles
    @pl.when(k == 0)
    def _():
        agg_ref[...] = jnp.zeros_like(agg_ref)

    # GIN aggregation with the eps=0 self term folded into the adjacency:
    # (A + I) @ h, streamed over K tiles so only one (N, tk) slab of A is resident.
    off = pl.multiple_of(k * tile_k, tile_k)
    agg_ref[...] += mm(adji_ref[...], h_ref[pl.ds(off, tile_k), :])

    # end of a layer's reduction: MLP -> BN -> pool; store activation for next layer
    @pl.when(k == nk - 1)
    def _():
        vecs = vec_ref[l]                                  # (4, H): b1, b2, scale, shift
        b1, b2 = vecs[0:1, :], vecs[1:2, :]
        scale, shift = vecs[2:3, :], vecs[3:4, :]

        t = jnp.maximum(mm(agg_ref[...], w1_ref[l]) + b1, 0.0)
        t = jnp.maximum(mm(t, w2_ref[l]) + b2, 0.0)
        h_new = t * scale + shift                          # BatchNorm1d (eval), f32 math
        h_mm = h_new.astype(matmul_dtype)                  # single cast, reused twice
        h_ref[...] = h_mm                                  # next layer's aggregation input

        # global_mean_pool fused in; JK 'cat' folded into the head lin1 accumulator
        pooled = mm(pool_ref[...], h_mm)                   # (G, H)
        zacc_ref[...] += mm(pooled, hw1_ref[l])

        # head: ReLU(lin1) -> (dropout = identity in eval) -> lin2 -> log_softmax
        @pl.when(l == num_layers - 1)
        def _():
            z = jnp.maximum(zacc_ref[...] + hb1_ref[...], 0.0)
            logits = mm(z, hw2_ref[...]) + hb2_ref[...]
            m = jnp.max(logits, axis=-1, keepdims=True)
            zl = logits - m
            out_ref[...] = zl - jnp.log(jnp.sum(jnp.exp(zl), axis=-1, keepdims=True))


# ------------------------------ pallas_call glue ----------------------------

def gin0_with_jk_forward(x, adj, pool_mat, params, *,
                         matmul_dtype=jnp.float32, tile_k=128):
    w1_s, w2_s, vec_s = params["layers"]
    hw1, hb1, hw2, hb2 = params["head"]
    num_layers, hidden = w2_s.shape[0], w2_s.shape[2]
    num_nodes = adj.shape[0]
    num_graphs = pool_mat.shape[0]
    num_classes = hw2.shape[1]

    # eps=0 self term folded into the adjacency (exact): (A + I) @ h == h + A @ h.
    adji = (adj + jnp.eye(num_nodes, dtype=adj.dtype)).astype(matmul_dtype)
    # TODO(synk): v5e/v6e int8-adjacency MXU path would also need int8 activations;
    # kept in matmul_dtype (bf16 is exact for counts <= 256 and halves adjacency bytes).

    # zero-pad feature dim to hidden so the layer-0 weight stacks with the rest (exact).
    x_pad = jnp.pad(x, ((0, 0), (0, hidden - x.shape[1])))

    # MXU operands stored directly in matmul_dtype; bias / BN vectors stay f32.
    w1_c = w1_s.astype(matmul_dtype)
    w2_c = w2_s.astype(matmul_dtype)
    hw1_c = hw1.reshape(num_layers, hidden, hidden).astype(matmul_dtype)
    hw2_c = hw2.astype(matmul_dtype)
    pool_c = pool_mat.astype(matmul_dtype)

    # K tiling of the adjacency stream (reduction axis last in the grid).
    tk = tile_k if num_nodes % tile_k == 0 else num_nodes
    num_k = num_nodes // tk

    # VMEM budget from the actual resident set (+2x headroom) instead of a hardcoded cap.
    mmb = jnp.dtype(matmul_dtype).itemsize
    resident_bytes = (
        2 * num_nodes * tk * mmb                        # double-buffered (A+I) tiles
        + num_nodes * hidden * 4                        # x_pad
        + 3 * num_layers * hidden * hidden * mmb        # w1, w2, head-lin1 stacks
        + num_layers * 4 * hidden * 4                   # packed bias/BN vectors
        + num_graphs * num_nodes * mmb                  # pool matrix
        + hidden * num_classes * mmb                    # head lin2 weight
        + (hidden + num_classes) * 4                    # head biases
        + num_nodes * hidden * mmb                      # resident h scratch
        + num_nodes * hidden * 4                        # aggregation accumulator
        + num_graphs * hidden * 4                       # head accumulator
        + num_graphs * num_classes * 4                  # output block
    )
    # TODO(synk): on v7x (64 MiB physical VMEM) pick tile_k / bf16 activations so this
    # stays <= ~48 MiB; v5e/v6e have 128 MiB.
    vmem_limit = int(min(max(2 * resident_bytes, 16 * 1024 * 1024), 96 * 1024 * 1024))

    kernel = functools.partial(fused_gin_jk_kernel, num_layers=num_layers,
                               tile_k=tk, matmul_dtype=matmul_dtype)

    const2 = lambda l, k: (0, 0)
    const3 = lambda l, k: (0, 0, 0)
    return pl.pallas_call(
        kernel,
        out_shape=jax.ShapeDtypeStruct((num_graphs, num_classes), jnp.float32),
        grid_spec=pltpu.PrefetchScalarGridSpec(
            num_scalar_prefetch=0,
            grid=(num_layers, num_k),                    # reduction (K) axis last
            in_specs=[
                # only streamed operand: one (N, tk) column slab of (A + I) per step.
                # TODO(synk): pipeline_mode=pl.Buffered(3) if profiles show exposed DMA waits.
                pl.BlockSpec((num_nodes, tk), lambda l, k: (0, k)),
                pl.BlockSpec((num_nodes, hidden), const2),            # x_pad (resident)
                pl.BlockSpec((num_layers, hidden, hidden), const3),   # w1 stack
                pl.BlockSpec((num_layers, hidden, hidden), const3),   # w2 stack
                pl.BlockSpec((num_layers, 4, hidden), const3),        # bias/BN vectors
                pl.BlockSpec((num_graphs, num_nodes), const2),        # pool matrix
                pl.BlockSpec((num_layers, hidden, hidden), const3),   # head lin1 (JK fold)
                pl.BlockSpec((1, hidden), const2),                    # head lin1 bias
                pl.BlockSpec((hidden, num_classes), const2),          # head lin2 weight
                pl.BlockSpec((1, num_classes), const2),               # head lin2 bias
            ],
            out_specs=pl.BlockSpec((num_graphs, num_classes), const2),
            scratch_shapes=[
                pltpu.VMEM((num_nodes, hidden), matmul_dtype),   # h, resident across layers
                pltpu.VMEM((num_nodes, hidden), jnp.float32),    # (A+I)@h accumulator
                pltpu.VMEM((num_graphs, hidden), jnp.float32),   # head lin1 accumulator
            ]),
        compiler_params=pltpu.CompilerParams(
            # both axes carry state (layers are sequential; K is a reduction).
            # TODO(synk): v7x dual-TC would want a node-row "parallel" axis, which this
            # fused multi-layer design intentionally does not have (cross-layer dependency).
            dimension_semantics=("arbitrary", "arbitrary"),
            vmem_limit_bytes=vmem_limit),
    )(adji, x_pad, w1_c, w2_c, vec_s, pool_c, hw1_c, hb1, hw2_c, hb2)


# ------------------------- parameter initialization -------------------------

def _linear_init(key, fan_in, fan_out):
    k1, k2 = jax.random.split(key)
    bound = 1.0 / jnp.sqrt(jnp.float32(fan_in))
    w = jax.random.uniform(k1, (fan_in, fan_out), jnp.float32, -bound, bound)
    b = jax.random.uniform(k2, (fan_out,), jnp.float32, -bound, bound)
    return w, b


def init_params(key, num_features, num_layers, hidden, num_classes):
    assert num_features <= hidden, "layer-0 input is zero-padded up to hidden"
    w1_list, w2_list, vec_list = [], [], []
    in_dim = num_features
    for _ in range(num_layers):
        key, k1, k2 = jax.random.split(key, 3)
        w1, b1 = _linear_init(k1, in_dim, hidden)
        w2, b2 = _linear_init(k2, hidden, hidden)
        # zero-pad layer-0 weight rows so all w1 stack as (L, H, H) -- exact
        w1 = jnp.pad(w1, ((0, hidden - in_dim), (0, 0)))
        # BatchNorm1d(hidden) default init folded into affine scale/shift (eval mode)
        gamma = jnp.ones((hidden,), jnp.float32)
        beta = jnp.zeros((hidden,), jnp.float32)
        rmean = jnp.zeros((hidden,), jnp.float32)
        rvar = jnp.ones((hidden,), jnp.float32)
        scale = gamma / jnp.sqrt(rvar + 1e-5)
        shift = beta - rmean * scale
        w1_list.append(w1)
        w2_list.append(w2)
        vec_list.append(jnp.stack([b1, b2, scale, shift]))            # (4, H)
        in_dim = hidden

    key, k1, k2 = jax.random.split(key, 3)
    hw1, hb1 = _linear_init(k1, num_layers * hidden, hidden)
    hw2, hb2 = _linear_init(k2, hidden, num_classes)

    layers = (jnp.stack(w1_list),                                      # (L, H, H)
              jnp.stack(w2_list),                                      # (L, H, H)
              jnp.stack(vec_list))                                     # (L, 4, H)
    head = (hw1,                                                       # (L*H, H)
            hb1.reshape(1, hidden),
            hw2,                                                       # (H, C)
            hb2.reshape(1, num_classes))
    return {"layers": layers, "head": head}


# ------------------------------ pure-JAX reference ---------------------------

def reference_forward(x, adj, pool_mat, params):
    hp = jax.lax.Precision.HIGHEST

    def dot(a, b):
        return jnp.dot(a, b, precision=hp)

    w1_s, w2_s, vec_s = params["layers"]
    hw1, hb1, hw2, hb2 = params["head"]
    num_layers, hidden = w2_s.shape[0], w2_s.shape[2]
    h = jnp.pad(x, ((0, 0), (0, hidden - x.shape[1])))
    xs = []
    for l in range(num_layers):
        b1, b2, scale, shift = vec_s[l, 0], vec_s[l, 1], vec_s[l, 2], vec_s[l, 3]
        agg = h + dot(adj, h)
        h = jnp.maximum(dot(agg, w1_s[l]) + b1, 0.0)
        h = jnp.maximum(dot(h, w2_s[l]) + b2, 0.0)
        h = h * scale + shift
        xs.append(dot(pool_mat, h))
    xcat = jnp.concatenate(xs, axis=-1)                                # JK 'cat'
    z = jnp.maximum(dot(xcat, hw1) + hb1, 0.0)
    logits = dot(z, hw2) + hb2
    return jax.nn.log_softmax(logits, axis=-1)


# ----------------------------------- main ------------------------------------

if __name__ == "__main__":
    num_nodes = 256        # small, but gives 2 K-tiles of 128 and aligned sublanes
    num_features = 16
    num_layers = 3
    hidden = 128           # lane-dense hidden (multiple of 128)
    num_classes = 8
    num_graphs = 2
    num_edges = 1024

    key = jax.random.PRNGKey(0)
    key, kx, ke, kp = jax.random.split(key, 4)

    # node features (N, F)
    x = jax.random.normal(kx, (num_nodes, num_features), jnp.float32)

    # batch assignment: first half graph 0, second half graph 1
    half = num_nodes // 2
    batch = jnp.concatenate([jnp.zeros((half,), jnp.int32),
                             jnp.ones((num_nodes - half,), jnp.int32)])

    # random intra-graph edges -> edge_index (2, E); densify to A[i, j] = #edges j->i
    ke1, ke2 = jax.random.split(ke)
    src0 = jax.random.randint(ke1, (num_edges // 2,), 0, half)
    dst0 = jax.random.randint(ke2, (num_edges // 2,), 0, half)
    edge_index = jnp.stack([jnp.concatenate([src0, src0 + half]),
                            jnp.concatenate([dst0, dst0 + half])])
    adj = jnp.zeros((num_nodes, num_nodes), jnp.float32)
    adj = adj.at[edge_index[1], edge_index[0]].add(1.0)

    # global_mean_pool as a pooling matrix (G, N): 1/|V_g| where batch[n] == g
    one_hot = (batch[None, :] == jnp.arange(num_graphs)[:, None]).astype(jnp.float32)
    counts = jnp.maximum(one_hot.sum(axis=1, keepdims=True), 1.0)
    pool_mat = one_hot / counts

    params = init_params(kp, num_features, num_layers, hidden, num_classes)

    ref = reference_forward(x, adj, pool_mat, params)

    # f32 path (exact semantics), checked against the pure-JAX reference
    fwd = jax.jit(functools.partial(gin0_with_jk_forward, params=params))
    out = jax.block_until_ready(fwd(x, adj, pool_mat))
    assert out.shape == (num_graphs, num_classes)
    assert jnp.allclose(out, ref, atol=2e-2, rtol=2e-2), "f32 kernel mismatch vs reference"

    # bf16 MXU-operand path (f32 accumulation / BN math); loose-tolerance check
    fwd_bf16 = jax.jit(functools.partial(gin0_with_jk_forward, params=params,
                                         matmul_dtype=jnp.bfloat16))
    out_bf16 = jax.block_until_ready(fwd_bf16(x, adj, pool_mat))
    assert out_bf16.shape == (num_graphs, num_classes)
    assert bool(jnp.all(jnp.isfinite(out_bf16)))
    assert jnp.allclose(out_bf16, ref, atol=1.5e-1, rtol=1.5e-1), \
        "bf16 kernel far from f32 reference"

    # TODO(synk): dropout(p=0.5) is identity here (eval mode); training-mode RNG masking
    # not implemented.
    print("KERNEL_OK")
</pallas_src>

<mosaic_0001>
module attributes {stable_mosaic.version = 11 : i64} {
  func.func @fused_gin_jk_kernel(%arg0: i32, %arg1: i32, %arg2: memref<256x128xf32, #tpu.memory_space<vmem>>, %arg3: memref<256x128xf32, #tpu.memory_space<vmem>>, %arg4: memref<3x128x128xf32, #tpu.memory_space<vmem>>, %arg5: memref<3x128x128xf32, #tpu.memory_space<vmem>>, %arg6: memref<3x4x128xf32, #tpu.memory_space<vmem>>, %arg7: memref<2x256xf32, #tpu.memory_space<vmem>>, %arg8: memref<3x128x128xf32, #tpu.memory_space<vmem>>, %arg9: memref<1x128xf32, #tpu.memory_space<vmem>>, %arg10: memref<128x8xf32, #tpu.memory_space<vmem>>, %arg11: memref<1x8xf32, #tpu.memory_space<vmem>>, %arg12: memref<2x8xf32, #tpu.memory_space<vmem>>, %arg13: memref<256x128xf32, #tpu.memory_space<vmem>>, %arg14: memref<256x128xf32, #tpu.memory_space<vmem>>, %arg15: memref<2x128xf32, #tpu.memory_space<vmem>>) attributes {dimension_semantics = [#tpu.dimension_semantics<arbitrary>, #tpu.dimension_semantics<arbitrary>], iteration_bounds = array<i64: 3, 2>, scalar_prefetch = 0 : i64, scratch_operands = 3 : i64, tpu.core_type = #tpu.core_type<tc>, window_params = [{transform_indices = @transform_0, window_bounds = array<i64: 256, 128>}, {pipeline_mode = #tpu.pipeline_mode<synchronous>, transform_indices = @transform_1, window_bounds = array<i64: 256, 128>}, {pipeline_mode = #tpu.pipeline_mode<synchronous>, transform_indices = @transform_2, window_bounds = array<i64: 3, 128, 128>}, {pipeline_mode = #tpu.pipeline_mode<synchronous>, transform_indices = @transform_3, window_bounds = array<i64: 3, 128, 128>}, {pipeline_mode = #tpu.pipeline_mode<synchronous>, transform_indices = @transform_4, window_bounds = array<i64: 3, 4, 128>}, {pipeline_mode = #tpu.pipeline_mode<synchronous>, transform_indices = @transform_5, window_bounds = array<i64: 2, 256>}, {pipeline_mode = #tpu.pipeline_mode<synchronous>, transform_indices = @transform_6, window_bounds = array<i64: 3, 128, 128>}, {pipeline_mode = #tpu.pipeline_mode<synchronous>, transform_indices = @transform_7, window_bounds = array<i64: 1, 128>}, {pipeline_mode = #tpu.pipeline_mode<synchronous>, transform_indices = @transform_8, window_bounds = array<i64: 128, 8>}, {pipeline_mode = #tpu.pipeline_mode<synchronous>, transform_indices = @transform_9, window_bounds = array<i64: 1, 8>}, {pipeline_mode = #tpu.pipeline_mode<synchronous>, transform_indices = @transform_10, window_bounds = array<i64: 2, 8>}]} {
    %c0_i32 = arith.constant 0 : i32
    %0 = arith.cmpi eq, %arg0, %c0_i32 : i32
    %c0_i32_0 = arith.constant 0 : i32
    %1 = arith.cmpi eq, %arg1, %c0_i32_0 : i32
    %2 = arith.andi %0, %1 : i1
    %3 = arith.extui %2 : i1 to i32
    %c0_i32_1 = arith.constant 0 : i32
    %4 = arith.cmpi ne, %3, %c0_i32_1 : i32
    scf.if %4 {
      %c0_11 = arith.constant 0 : index
      %c0_12 = arith.constant 0 : index
      %20 = vector.load %arg3[%c0_11, %c0_12] : memref<256x128xf32, #tpu.memory_space<vmem>>, vector<256x128xf32>
      %c0_13 = arith.constant 0 : index
      %c0_14 = arith.constant 0 : index
      %21 = vector.load %arg13[%c0_13, %c0_14] : memref<256x128xf32, #tpu.memory_space<vmem>>, vector<256x128xf32>
      tpu.vector_store %arg13[%c0_13, %c0_14], %20 {strides = array<i32>} : memref<256x128xf32, #tpu.memory_space<vmem>>, vector<256x128xf32>,
      %cst_15 = arith.constant 0.000000e+00 : f32
      %22 = vector.broadcast %cst_15 : f32 to vector<2x128xf32>
      %c0_16 = arith.constant 0 : index
      %c0_17 = arith.constant 0 : index
      %23 = vector.load %arg15[%c0_16, %c0_17] : memref<2x128xf32, #tpu.memory_space<vmem>>, vector<2x128xf32>
      tpu.vector_store %arg15[%c0_16, %c0_17], %22 {strides = array<i32>} : memref<2x128xf32, #tpu.memory_space<vmem>>, vector<2x128xf32>,
    } else {
    }
    %c0_i32_2 = arith.constant 0 : i32
    %5 = arith.cmpi eq, %arg1, %c0_i32_2 : i32
    %6 = arith.extui %5 : i1 to i32
    %c0_i32_3 = arith.constant 0 : i32
    %7 = arith.cmpi ne, %6, %c0_i32_3 : i32
    scf.if %7 {
      %cst_11 = arith.constant 0.000000e+00 : f32
      %20 = vector.broadcast %cst_11 : f32 to vector<256x128xf32>
      %c0_12 = arith.constant 0 : index
      %c0_13 = arith.constant 0 : index
      %21 = vector.load %arg14[%c0_12, %c0_13] : memref<256x128xf32, #tpu.memory_space<vmem>>, vector<256x128xf32>
      tpu.vector_store %arg14[%c0_12, %c0_13], %20 {strides = array<i32>} : memref<256x128xf32, #tpu.memory_space<vmem>>, vector<256x128xf32>,
    } else {
    }
    %c128_i32 = arith.constant 128 : i32
    %8 = arith.muli %arg1, %c128_i32 : i32
    %9 = tpu.assume_multiple %8, 128 : i32
    %c0 = arith.constant 0 : index
    %c0_4 = arith.constant 0 : index
    %10 = vector.load %arg14[%c0, %c0_4] : memref<256x128xf32, #tpu.memory_space<vmem>>, vector<256x128xf32>
    %c0_5 = arith.constant 0 : index
    %c0_6 = arith.constant 0 : index
    %11 = vector.load %arg2[%c0_5, %c0_6] : memref<256x128xf32, #tpu.memory_space<vmem>>, vector<256x128xf32>
    %12 = arith.index_cast %9 : i32 to index
    %c0_7 = arith.constant 0 : index
    %13 = vector.load %arg13[%12, %c0_7] : memref<256x128xf32, #tpu.memory_space<vmem>>, vector<128x128xf32>
    %cst = arith.constant dense<0.000000e+00> : vector<256x128xf32>
    %14 = tpu.matmul %11, %13, %cst {dimension_numbers = #tpu.dot_dimension_numbers<[1], [0], [0], [1], [0, 0, 1, 1], [], []>} : vector<256x128xf32>, vector<128x128xf32>, vector<256x128xf32> -> vector<256x128xf32>
    %15 = arith.addf %10, %14 : vector<256x128xf32>
    %c0_8 = arith.constant 0 : index
    %c0_9 = arith.constant 0 : index
    %16 = vector.load %arg14[%c0_8, %c0_9] : memref<256x128xf32, #tpu.memory_space<vmem>>, vector<256x128xf32>
    tpu.vector_store %arg14[%c0_8, %c0_9], %15 {strides = array<i32>} : memref<256x128xf32, #tpu.memory_space<vmem>>, vector<256x128xf32>,
    %c1_i32 = arith.constant 1 : i32
    %17 = arith.cmpi eq, %arg1, %c1_i32 : i32
    %18 = arith.extui %17 : i1 to i32
    %c0_i32_10 = arith.constant 0 : i32
    %19 = arith.cmpi ne, %18, %c0_i32_10 : i32
    scf.if %19 {
      %20 = arith.index_cast %arg0 : i32 to index
      %c0_11 = arith.constant 0 : index
      %c0_12 = arith.constant 0 : index
      %21 = vector.load %arg6[%20, %c0_11, %c0_12] : memref<3x4x128xf32, #tpu.memory_space<vmem>>, vector<1x4x128xf32>
      %22 = vector.shape_cast %21 : vector<1x4x128xf32> to vector<4x128xf32>
      %23 = vector.extract_strided_slice %22 {offsets = [0, 0], sizes = [1, 128], strides = [1, 1]} : vector<4x128xf32> to vector<1x128xf32>
      %24 = vector.extract_strided_slice %22 {offsets = [1, 0], sizes = [1, 128], strides = [1, 1]} : vector<4x128xf32> to vector<1x128xf32>
      %25 = vector.extract_strided_slice %22 {offsets = [2, 0], sizes = [1, 128], strides = [1, 1]} : vector<4x128xf32> to vector<1x128xf32>
      %26 = vector.extract_strided_slice %22 {offsets = [3, 0], sizes = [1, 128], strides = [1, 1]} : vector<4x128xf32> to vector<1x128xf32>
      %c0_13 = arith.constant 0 : index
      %c0_14 = arith.constant 0 : index
      %27 = vector.load %arg14[%c0_13, %c0_14] : memref<256x128xf32, #tpu.memory_space<vmem>>, vector<256x128xf32>
      %28 = arith.index_cast %arg0 : i32 to index
      %c0_15 = arith.constant 0 : index
      %c0_16 = arith.constant 0 : index
      %29 = vector.load %arg4[%28, %c0_15, %c0_16] : memref<3x128x128xf32, #tpu.memory_space<vmem>>, vector<1x128x128xf32>
      %30 = vector.shape_cast %29 : vector<1x128x128xf32> to vector<128x128xf32>
      %cst_17 = arith.constant dense<0.000000e+00> : vector<256x128xf32>
      %31 = tpu.matmul %27, %30, %cst_17 {dimension_numbers = #tpu.dot_dimension_numbers<[1], [0], [0], [1], [0, 0, 1, 1], [], []>} : vector<256x128xf32>, vector<128x128xf32>, vector<256x128xf32> -> vector<256x128xf32>
      %32 = vector.broadcast %23 : vector<1x128xf32> to vector<256x128xf32>
      %33 = arith.addf %31, %32 : vector<256x128xf32>
      %cst_18 = arith.constant 0.000000e+00 : f32
      %34 = vector.broadcast %cst_18 : f32 to vector<256x128xf32>
      %35 = arith.maximumf %33, %34 : vector<256x128xf32>
      %36 = arith.index_cast %arg0 : i32 to index
      %c0_19 = arith.constant 0 : index
      %c0_20 = arith.constant 0 : index
      %37 = vector.load %arg5[%36, %c0_19, %c0_20] : memref<3x128x128xf32, #tpu.memory_space<vmem>>, vector<1x128x128xf32>
      %38 = vector.shape_cast %37 : vector<1x128x128xf32> to vector<128x128xf32>
      %cst_21 = arith.constant dense<0.000000e+00> : vector<256x128xf32>
      %39 = tpu.matmul %35, %38, %cst_21 {dimension_numbers = #tpu.dot_dimension_numbers<[1], [0], [0], [1], [0, 0, 1, 1], [], []>} : vector<256x128xf32>, vector<128x128xf32>, vector<256x128xf32> -> vector<256x128xf32>
      %40 = vector.broadcast %24 : vector<1x128xf32> to vector<256x128xf32>
      %41 = arith.addf %39, %40 : vector<256x128xf32>
      %cst_22 = arith.constant 0.000000e+00 : f32
      %42 = vector.broadcast %cst_22 : f32 to vector<256x128xf32>
      %43 = arith.maximumf %41, %42 : vector<256x128xf32>
      %44 = vector.broadcast %25 : vector<1x128xf32> to vector<256x128xf32>
      %45 = arith.mulf %43, %44 : vector<256x128xf32>
      %46 = vector.broadcast %26 : vector<1x128xf32> to vector<256x128xf32>
      %47 = arith.addf %45, %46 : vector<256x128xf32>
      %c0_23 = arith.constant 0 : index
      %c0_24 = arith.constant 0 : index
      %48 = vector.load %arg13[%c0_23, %c0_24] : memref<256x128xf32, #tpu.memory_space<vmem>>, vector<256x128xf32>
      tpu.vector_store %arg13[%c0_23, %c0_24], %47 {strides = array<i32>} : memref<256x128xf32, #tpu.memory_space<vmem>>, vector<256x128xf32>,
      %c0_25 = arith.constant 0 : index
      %c0_26 = arith.constant 0 : index
      %49 = vector.load %arg7[%c0_25, %c0_26] : memref<2x256xf32, #tpu.memory_space<vmem>>, vector<2x256xf32>
      %cst_27 = arith.constant dense<0.000000e+00> : vector<2x128xf32>
      %50 = tpu.matmul %49, %47, %cst_27 {dimension_numbers = #tpu.dot_dimension_numbers<[1], [0], [0], [1], [0, 0, 1, 1], [], []>} : vector<2x256xf32>, vector<256x128xf32>, vector<2x128xf32> -> vector<2x128xf32>
      %c0_28 = arith.constant 0 : index
      %c0_29 = arith.constant 0 : index
      %51 = vector.load %arg15[%c0_28, %c0_29] : memref<2x128xf32, #tpu.memory_space<vmem>>, vector<2x128xf32>
      %52 = arith.index_cast %arg0 : i32 to index
      %c0_30 = arith.constant 0 : index
      %c0_31 = arith.constant 0 : index
      %53 = vector.load %arg8[%52, %c0_30, %c0_31] : memref<3x128x128xf32, #tpu.memory_space<vmem>>, vector<1x128x128xf32>
      %54 = vector.shape_cast %53 : vector<1x128x128xf32> to vector<128x128xf32>
      %cst_32 = arith.constant dense<0.000000e+00> : vector<2x128xf32>
      %55 = tpu.matmul %50, %54, %cst_32 {dimension_numbers = #tpu.dot_dimension_numbers<[1], [0], [0], [1], [0, 0, 1, 1], [], []>} : vector<2x128xf32>, vector<128x128xf32>, vector<2x128xf32> -> vector<2x128xf32>
      %56 = arith.addf %51, %55 : vector<2x128xf32>
      %c0_33 = arith.constant 0 : index
      %c0_34 = arith.constant 0 : index
      %57 = vector.load %arg15[%c0_33, %c0_34] : memref<2x128xf32, #tpu.memory_space<vmem>>, vector<2x128xf32>
      tpu.vector_store %arg15[%c0_33, %c0_34], %56 {strides = array<i32>} : memref<2x128xf32, #tpu.memory_space<vmem>>, vector<2x128xf32>,
      %c2_i32 = arith.constant 2 : i32
      %58 = arith.cmpi eq, %arg0, %c2_i32 : i32
      %59 = arith.extui %58 : i1 to i32
      %c0_i32_35 = arith.constant 0 : i32
      %60 = arith.cmpi ne, %59, %c0_i32_35 : i32
      scf.if %60 {
        %c0_36 = arith.constant 0 : index
        %c0_37 = arith.constant 0 : index
        %61 = vector.load %arg15[%c0_36, %c0_37] : memref<2x128xf32, #tpu.memory_space<vmem>>, vector<2x128xf32>
        %c0_38 = arith.constant 0 : index
        %c0_39 = arith.constant 0 : index
        %62 = vector.load %arg9[%c0_38, %c0_39] : memref<1x128xf32, #tpu.memory_space<vmem>>, vector<1x128xf32>
        %63 = vector.broadcast %62 : vector<1x128xf32> to vector<2x128xf32>
        %64 = arith.addf %61, %63 : vector<2x128xf32>
        %cst_40 = arith.constant 0.000000e+00 : f32
        %65 = vector.broadcast %cst_40 : f32 to vector<2x128xf32>
        %66 = arith.maximumf %64, %65 : vector<2x128xf32>
        %c0_41 = arith.constant 0 : index
        %c0_42 = arith.constant 0 : index
        %67 = vector.load %arg10[%c0_41, %c0_42] : memref<128x8xf32, #tpu.memory_space<vmem>>, vector<128x8xf32>
        %cst_43 = arith.constant dense<0.000000e+00> : vector<2x8xf32>
        %68 = tpu.matmul %66, %67, %cst_43 {dimension_numbers = #tpu.dot_dimension_numbers<[1], [0], [0], [1], [0, 0, 1, 1], [], []>} : vector<2x128xf32>, vector<128x8xf32>, vector<2x8xf32> -> vector<2x8xf32>
        %c0_44 = arith.constant 0 : index
        %c0_45 = arith.constant 0 : index
        %69 = vector.load %arg11[%c0_44, %c0_45] : memref<1x8xf32, #tpu.memory_space<vmem>>, vector<1x8xf32>
        %70 = vector.broadcast %69 : vector<1x8xf32> to vector<2x8xf32>
        %71 = arith.addf %68, %70 : vector<2x8xf32>
        %cst_46 = arith.constant dense<0xFF800000> : vector<2xf32>
        %72 = vector.multi_reduction <maximumf>, %71, %cst_46 [1] : vector<2x8xf32> to vector<2xf32>
        %73 = vector.shape_cast %72 : vector<2xf32> to vector<2x1xf32>
        %74 = vector.broadcast %73 : vector<2x1xf32> to vector<2x8xf32>
        %75 = arith.subf %71, %74 : vector<2x8xf32>
        %76 = math.exp %75 : vector<2x8xf32>
        %cst_47 = arith.constant dense<0.000000e+00> : vector<2xf32>
        %77 = vector.multi_reduction <add>, %76, %cst_47 [1] : vector<2x8xf32> to vector<2xf32>
        %78 = vector.shape_cast %77 : vector<2xf32> to vector<2x1xf32>
        %79 = math.log %78 : vector<2x1xf32>
        %80 = vector.broadcast %79 : vector<2x1xf32> to vector<2x8xf32>
        %81 = arith.subf %75, %80 : vector<2x8xf32>
        %c0_48 = arith.constant 0 : index
        %c0_49 = arith.constant 0 : index
        %82 = vector.load %arg12[%c0_48, %c0_49] : memref<2x8xf32, #tpu.memory_space<vmem>>, vector<2x8xf32>
        tpu.vector_store %arg12[%c0_48, %c0_49], %81 {strides = array<i32>} : memref<2x8xf32, #tpu.memory_space<vmem>>, vector<2x8xf32>,
      } else {
      }
    } else {
    }
    return
  }
  func.func @transform_0(%arg0: i32, %arg1: i32) -> (i32, i32) {
    %c0_i32 = arith.constant 0 : i32
    %c0_i32_0 = arith.constant 0 : i32
    return %c0_i32, %arg1 : i32, i32
  }
  func.func @transform_1(%arg0: i32, %arg1: i32) -> (i32, i32) {
    %c0_i32 = arith.constant 0 : i32
    %c0_i32_0 = arith.constant 0 : i32
    %c0_i32_1 = arith.constant 0 : i32
    return %c0_i32, %c0_i32_0 : i32, i32
  }
  func.func @transform_2(%arg0: i32, %arg1: i32) -> (i32, i32, i32) {
    %c0_i32 = arith.constant 0 : i32
    %c0_i32_0 = arith.constant 0 : i32
    %c0_i32_1 = arith.constant 0 : i32
    %c0_i32_2 = arith.constant 0 : i32
    return %c0_i32, %c0_i32_0, %c0_i32_1 : i32, i32, i32
  }
  func.func @transform_3(%arg0: i32, %arg1: i32) -> (i32, i32, i32) {
    %c0_i32 = arith.constant 0 : i32
    %c0_i32_0 = arith.constant 0 : i32
    %c0_i32_1 = arith.constant 0 : i32
    %c0_i32_2 = arith.constant 0 : i32
    return %c0_i32, %c0_i32_0, %c0_i32_1 : i32, i32, i32
  }
  func.func @transform_4(%arg0: i32, %arg1: i32) -> (i32, i32, i32) {
    %c0_i32 = arith.constant 0 : i32
    %c0_i32_0 = arith.constant 0 : i32
    %c0_i32_1 = arith.constant 0 : i32
    %c0_i32_2 = arith.constant 0 : i32
    return %c0_i32, %c0_i32_0, %c0_i32_1 : i32, i32, i32
  }
  func.func @transform_5(%arg0: i32, %arg1: i32) -> (i32, i32) {
    %c0_i32 = arith.constant 0 : i32
    %c0_i32_0 = arith.constant 0 : i32
    %c0_i32_1 = arith.constant 0 : i32
    return %c0_i32, %c0_i32_0 : i32, i32
  }
  func.func @transform_6(%arg0: i32, %arg1: i32) -> (i32, i32, i32) {
    %c0_i32 = arith.constant 0 : i32
    %c0_i32_0 = arith.constant 0 : i32
    %c0_i32_1 = arith.constant 0 : i32
    %c0_i32_2 = arith.constant 0 : i32
    return %c0_i32, %c0_i32_0, %c0_i32_1 : i32, i32, i32
  }
  func.func @transform_7(%arg0: i32, %arg1: i32) -> (i32, i32) {
    %c0_i32 = arith.constant 0 : i32
    %c0_i32_0 = arith.constant 0 : i32
    %c0_i32_1 = arith.constant 0 : i32
    return %c0_i32, %c0_i32_0 : i32, i32
  }
  func.func @transform_8(%arg0: i32, %arg1: i32) -> (i32, i32) {
    %c0_i32 = arith.constant 0 : i32
    %c0_i32_0 = arith.constant 0 : i32
    %c0_i32_1 = arith.constant 0 : i32
    return %c0_i32, %c0_i32_0 : i32, i32
  }
  func.func @transform_9(%arg0: i32, %arg1: i32) -> (i32, i32) {
    %c0_i32 = arith.constant 0 : i32
    %c0_i32_0 = arith.constant 0 : i32
    %c0_i32_1 = arith.constant 0 : i32
    return %c0_i32, %c0_i32_0 : i32, i32
  }
  func.func @transform_10(%arg0: i32, %arg1: i32) -> (i32, i32) {
    %c0_i32 = arith.constant 0 : i32
    %c0_i32_0 = arith.constant 0 : i32
    %c0_i32_1 = arith.constant 0 : i32
    return %c0_i32, %c0_i32_0 : i32, i32
  }
}

</mosaic_0001>

<bundles_post_ra>
// kernel: gin0_with_jk_forward.1
= control target key start
LH: loop header
LB: loop body
LE: loop exit
PB: predicated region body
PF: predicated region fallthrough
CT: control target
= control target key end

     0   :  { %15 = vsyncpa [#allocation7], 0  ;;  %s2855_s13 = smov 0   ;;  %s2857_s14 = smov 0   ;;  %s3571_s0 = inlined_call_operand.vmem [shape: f32[256,256], index: 0, kind: input, shape index: {}]   ;;  %s3572_s1 = inlined_call_operand.vmem [shape: f32[256,128], index: 1, kind: input, shape index: {}]   ;;  %s3573_s2 = inlined_call_operand.vmem [shape: f32[3,128,128], index: 2, kind: input, shape index: {}]   ;;  %s3574_s3 = inlined_call_operand.vmem [shape: f32[3,128,128], index: 3, kind: input, shape index: {}]   ;;  %s3575_s4 = inlined_call_operand.vmem [shape: f32[3,4,128], index: 4, kind: input, shape index: {}]   ;;  %s3576_s5 = inlined_call_operand.vmem [shape: f32[2,256], index: 5, kind: input, shape index: {}]   ;;  %s3577_s6 = inlined_call_operand.vmem [shape: f32[3,128,128], index: 6, kind: input, shape index: {}]   ;;  %s3578_s7 = inlined_call_operand.vmem [shape: f32[1,128], index: 7, kind: input, shape index: {}]   ;;  %s3579_s8 = inlined_call_operand.vmem [shape: f32[128,8], index: 8, kind: input, shape index: {}]   ;;  %s3580_s9 = inlined_call_operand.vmem [shape: f32[1,8], index: 9, kind: input, shape index: {}]   ;;  %s3581_s10 = inlined_call_operand.hbm [shape: f32[2,8], index: 10, kind: output, shape index: {}]  }
   0x1   :  { %s2859_s15 = smov 0   ;;  %s2861_s16 = smov 0  }
   0x2   :  { %s2863_s17 = smov 0   ;;  %s2865_s18 = smov 0  }
   0x3   :  { %s2867_s19 = smov 0  }
   0x4 LB: > { %s30_s21 = sadd.s32 1, %s2783_s17  ;;  %s33_s22 = sadd.s32 1, %s2787_s18  ;;  %s2791_s19 = sphi %s2867_s19, %s21_s19   ;;  %s2787_s18 = sphi %s2865_s18, %s3589_s18   ;;  %s2783_s17 = sphi %s2863_s17, %s3588_s17   ;;  %s2779_s16 = sphi %s2861_s16, %s3587_s16   ;;  %s2775_s15 = sphi %s2859_s15, %s3586_s15   ;;  %s2771_s14 = sphi %s2857_s14, %s3585_s14   ;;  %s2767_s13 = sphi %s2855_s13, %s3584_s13  }
   0x5   : > { %p31_p0 = scmp.ge.s32.totalorder %s30_s21, 2  ;;  %s40_s23 = sadd.s32 1, %s2771_s14 }
   0x6   : > { %p47_p1 = scmp.ne.s32.totalorder %s2771_s14, %s2767_s13  ;;  %p48_p2 = scmp.eq.s32.totalorder %s2791_s19, 0 }
   0x7   : > { %s3591_s21 = smov (%p31_p0, %s30_s21), 0  ;;  %s3593_s22 = smov (!%p31_p0, %s33_s22), %s2787_s18 }
   0x8   : > { %s37_s24 = ssub.s32 %s2783_s17, %s3591_s21  ;;  %p35_p3 = scmp.ge.s32.totalorder %s3593_s22, 3 }
   0x9   : > { %p38_p4 = scmp.eq.s32.totalorder %s37_s24, 0  ;;  %p49_p5 = por %p48_p2, %p47_p1 }
   0xa   : > { %s3595_s22 = smov (%p35_p3, %s3593_s22), 0  ;;  %p2063_p6 = scmp.ge.s32.totalorder %s2791_s19, 6 }
   0xb   : > { %s2905_s25 = scalar_select %p38_p4, %s2771_s14, %s40_s23  }
   0xc   : > { %310 = sbr.rel (%p2063_p6) target bundleno = 37 (0x25), region = 52 }
  0x11   : > { %313 = sbr.rel (!%p49_p5) target bundleno = 37 (0x25), region = 56  ;;  %s315_s26 = sand.u32 (%p49_p5), 1, %s2771_s14  }
  0x12   : > { %s2065_s27 = sshll.u32 (%p49_p5), %s2783_s17, 3  ;;  %s2064_s28 = sshll.u32 (%p49_p5), %s315_s26, 8 }
  0x13   : > { %s2913_s11 = scalar_lea.vmem (%p49_p5), %s3571_s0, %s2065_s27  ;;  %s2918_s12 = scalar_lea.vmem (%p49_p5), [#allocation5], %s2064_s28 }
  0x14   : > { %v410_v0 = vld [vmem:[%s2913_s11] sm:$0xff] (%p49_p5)  ;;  %v412_v1 = vld [vmem:[%s2913_s11 + $0x10] sm:$0xff] (%p49_p5) }
  0x15   : > { %v414_v2 = vld [vmem:[%s2913_s11 + $0x20] sm:$0xff] (%p49_p5)  ;;  %411 = vst [vmem:[%s2918_s12] sm:$0xff] (%p49_p5), %v410_v0  ;;  %413 = vst [vmem:[%s2918_s12 + $0x8] sm:$0xff] (%p49_p5), %v412_v1  ;;  %v416_v3 = vld [vmem:[%s2913_s11 + $0x30] sm:$0xff] (%p49_p5) }
  0x16   : > { %415 = vst [vmem:[%s2918_s12 + $0x10] sm:$0xff] %v414_v2  ;;  %v418_v4 = vld [vmem:[%s2913_s11 + $0x40] sm:$0xff]  ;;  %v420_v5 = vld [vmem:[%s2913_s11 + $0x50] sm:$0xff]  ;;  %417 = vst [vmem:[%s2918_s12 + $0x18] sm:$0xff] %v416_v3 }
  0x17   : > { %419 = vst [vmem:[%s2918_s12 + $0x20] sm:$0xff] %v418_v4  ;;  %421 = vst [vmem:[%s2918_s12 + $0x28] sm:$0xff] %v420_v5  ;;  %v422_v6 = vld [vmem:[%s2913_s11 + $0x60] sm:$0xff]  ;;  %v424_v7 = vld [vmem:[%s2913_s11 + $0x70] sm:$0xff] }
  0x18   : > { %v426_v8 = vld [vmem:[%s2913_s11 + $0x80] sm:$0xff]  ;;  %423 = vst [vmem:[%s2918_s12 + $0x30] sm:$0xff] %v422_v6  ;;  %425 = vst [vmem:[%s2918_s12 + $0x38] sm:$0xff] %v424_v7  ;;  %v428_v9 = vld [vmem:[%s2913_s11 + $0x90] sm:$0xff] }
  0x19   : > { %427 = vst [vmem:[%s2918_s12 + $0x40] sm:$0xff] %v426_v8  ;;  %v430_v10 = vld [vmem:[%s2913_s11 + $0xa0] sm:$0xff]  ;;  %v432_v11 = vld [vmem:[%s2913_s11 + $0xb0] sm:$0xff]  ;;  %429 = vst [vmem:[%s2918_s12 + $0x48] sm:$0xff] %v428_v9 }
  0x1a   : > { %431 = vst [vmem:[%s2918_s12 + $0x50] sm:$0xff] %v430_v10  ;;  %433 = vst [vmem:[%s2918_s12 + $0x58] sm:$0xff] %v432_v11  ;;  %v434_v12 = vld [vmem:[%s2913_s11 + $0xc0] sm:$0xff]  ;;  %v436_v13 = vld [vmem:[%s2913_s11 + $0xd0] sm:$0xff] }
  0x1b   : > { %v438_v14 = vld [vmem:[%s2913_s11 + $0xe0] sm:$0xff]  ;;  %435 = vst [vmem:[%s2918_s12 + $0x60] sm:$0xff] %v434_v12  ;;  %437 = vst [vmem:[%s2918_s12 + $0x68] sm:$0xff] %v436_v13  ;;  %v440_v15 = vld [vmem:[%s2913_s11 + $0xf0] sm:$0xff] }
  0x1c   : > { %439 = vst [vmem:[%s2918_s12 + $0x70] sm:$0xff] %v438_v14  ;;  %v442_v16 = vld [vmem:[%s2913_s11 + $0x100] sm:$0xff]  ;;  %v444_v17 = vld [vmem:[%s2913_s11 + $0x110] sm:$0xff]  ;;  %441 = vst [vmem:[%s2918_s12 + $0x78] sm:$0xff] %v440_v15 }
  0x1d   : > { %443 = vst [vmem:[%s2918_s12 + $0x80] sm:$0xff] %v442_v16  ;;  %445 = vst [vmem:[%s2918_s12 + $0x88] sm:$0xff] %v444_v17  ;;  %v446_v18 = vld [vmem:[%s2913_s11 + $0x120] sm:$0xff]  ;;  %v448_v19 = vld [vmem:[%s2913_s11 + $0x130] sm:$0xff] }
  0x1e   : > { %v450_v20 = vld [vmem:[%s2913_s11 + $0x140] sm:$0xff]  ;;  %447 = vst [vmem:[%s2918_s12 + $0x90] sm:$0xff] %v446_v18  ;;  %449 = vst [vmem:[%s2918_s12 + $0x98] sm:$0xff] %v448_v19  ;;  %v452_v21 = vld [vmem:[%s2913_s11 + $0x150] sm:$0xff] }
  0x1f   : > { %451 = vst [vmem:[%s2918_s12 + $0xa0] sm:$0xff] %v450_v20  ;;  %v454_v22 = vld [vmem:[%s2913_s11 + $0x160] sm:$0xff]  ;;  %v456_v23 = vld [vmem:[%s2913_s11 + $0x170] sm:$0xff]  ;;  %453 = vst [vmem:[%s2918_s12 + $0xa8] sm:$0xff] %v452_v21 }
  0x20   : > { %455 = vst [vmem:[%s2918_s12 + $0xb0] sm:$0xff] %v454_v22  ;;  %457 = vst [vmem:[%s2918_s12 + $0xb8] sm:$0xff] %v456_v23  ;;  %v458_v24 = vld [vmem:[%s2913_s11 + $0x180] sm:$0xff]  ;;  %v460_v25 = vld [vmem:[%s2913_s11 + $0x190] sm:$0xff] }
  0x21   : > { %v462_v26 = vld [vmem:[%s2913_s11 + $0x1a0] sm:$0xff]  ;;  %459 = vst [vmem:[%s2918_s12 + $0xc0] sm:$0xff] %v458_v24  ;;  %461 = vst [vmem:[%s2918_s12 + $0xc8] sm:$0xff] %v460_v25  ;;  %v464_v27 = vld [vmem:[%s2913_s11 + $0x1b0] sm:$0xff] }
  0x22   : > { %463 = vst [vmem:[%s2918_s12 + $0xd0] sm:$0xff] %v462_v26  ;;  %v466_v28 = vld [vmem:[%s2913_s11 + $0x1c0] sm:$0xff]  ;;  %v468_v29 = vld [vmem:[%s2913_s11 + $0x1d0] sm:$0xff]  ;;  %465 = vst [vmem:[%s2918_s12 + $0xd8] sm:$0xff] %v464_v27 }
  0x23   : > { %467 = vst [vmem:[%s2918_s12 + $0xe0] sm:$0xff] %v466_v28  ;;  %469 = vst [vmem:[%s2918_s12 + $0xe8] sm:$0xff] %v468_v29  ;;  %v470_v30 = vld [vmem:[%s2913_s11 + $0x1e0] sm:$0xff]  ;;  %v472_v31 = vld [vmem:[%s2913_s11 + $0x1f0] sm:$0xff] }
  0x24   : > { %471 = vst [vmem:[%s2918_s12 + $0xf0] sm:$0xff] %v470_v30  ;;  %473 = vst [vmem:[%s2918_s12 + $0xf8] sm:$0xff] %v472_v31 }
  0x25 PF: > { %p2066_p7 = scmp.ge.s32.totalorder %s2791_s19, 1  ;;  %p478_p8 = scmp.lt.s32.totalorder %s2791_s19, 7 }
  0x27   : > { %p479_p9 = pnand %p2066_p7, %p478_p8 }
  0x28   : > { %s485_s23 = sand.u32 (!%p479_p9), 1, %s2767_s13   ;;  %p517_p10 = scmp.eq.s32.totalorder (!%p479_p9), %s2779_s16, 0 }
  0x29   : > { %482 = sbr.rel (%p479_p9) target bundleno = 1831 (0x727), region = 94  ;;  %s2067_s24 = sshll.u32 (!%p479_p9), %s485_s23, 8 }
  0x2a   : > { %p518_p11 = scmp.eq.s32.totalorder (!%p479_p9), %s2775_s15, 0  ;;  %s2986_s26 = scalar_lea.vmem (!%p479_p9), [#allocation5], %s2067_s24 }
  0x2c   : > { %p519_p12 = pnand (!%p479_p9), %p518_p11, %p517_p10 }
  0x2e   : > { %522 = sbr.rel (%p519_p12) target bundleno = 69 (0x45), region = 102 }
  0x33   : > { %v523_v32 = vld [vmem:[%s3572_s1] sm:$0xff]  ;;  %v524_v33 = vld [vmem:[%s3572_s1 + $0x8] sm:$0xff]  ;;  %v525_v34 = vld [vmem:[%s3572_s1 + $0x10] sm:$0xff]  ;;  %v2793_v38 = vmov 0.0  }
  0x34   : > { %555 = vst [vmem:[#allocation2] sm:$0xff] %v523_v32  ;;  %556 = vst [vmem:[#allocation2 + $0x8] sm:$0xff] %v524_v33  ;;  %v526_v35 = vld [vmem:[%s3572_s1 + $0x18] sm:$0xff]  ;;  %v527_v36 = vld [vmem:[%s3572_s1 + $0x20] sm:$0xff] }
  0x35   : > { %557 = vst [vmem:[#allocation2 + $0x10] sm:$0xff] %v525_v34  ;;  %v528_v37 = vld [vmem:[%s3572_s1 + $0x28] sm:$0xff]  ;;  %587 = vst [vmem:[#allocation4] sm:$0x3] %v2793_v38  ;;  %v529_v39 = vld [vmem:[%s3572_s1 + $0x30] sm:$0xff] }
  0x36   : > { %558 = vst [vmem:[#allocation2 + $0x18] sm:$0xff] %v526_v35  ;;  %559 = vst [vmem:[#allocation2 + $0x20] sm:$0xff] %v527_v36  ;;  %v530_v40 = vld [vmem:[%s3572_s1 + $0x38] sm:$0xff]  ;;  %v531_v41 = vld [vmem:[%s3572_s1 + $0x40] sm:$0xff] }
  0x37   : > { %560 = vst [vmem:[#allocation2 + $0x28] sm:$0xff] %v528_v37  ;;  %561 = vst [vmem:[#allocation2 + $0x30] sm:$0xff] %v529_v39  ;;  %v532_v42 = vld [vmem:[%s3572_s1 + $0x48] sm:$0xff]  ;;  %v533_v43 = vld [vmem:[%s3572_s1 + $0x50] sm:$0xff] }
  0x38   : > { %562 = vst [vmem:[#allocation2 + $0x38] sm:$0xff] %v530_v40  ;;  %563 = vst [vmem:[#allocation2 + $0x40] sm:$0xff] %v531_v41  ;;  %v534_v44 = vld [vmem:[%s3572_s1 + $0x58] sm:$0xff]  ;;  %v535_v45 = vld [vmem:[%s3572_s1 + $0x60] sm:$0xff] }
  0x39   : > { %564 = vst [vmem:[#allocation2 + $0x48] sm:$0xff] %v532_v42  ;;  %565 = vst [vmem:[#allocation2 + $0x50] sm:$0xff] %v533_v43  ;;  %v536_v46 = vld [vmem:[%s3572_s1 + $0x68] sm:$0xff]  ;;  %v537_v47 = vld [vmem:[%s3572_s1 + $0x70] sm:$0xff] }
  0x3a   : > { %566 = vst [vmem:[#allocation2 + $0x58] sm:$0xff] %v534_v44  ;;  %567 = vst [vmem:[#allocation2 + $0x60] sm:$0xff] %v535_v45  ;;  %v538_v48 = vld [vmem:[%s3572_s1 + $0x78] sm:$0xff]  ;;  %v539_v49 = vld [vmem:[%s3572_s1 + $0x80] sm:$0xff] }
  0x3b   : > { %568 = vst [vmem:[#allocation2 + $0x68] sm:$0xff] %v536_v46  ;;  %569 = vst [vmem:[#allocation2 + $0x70] sm:$0xff] %v537_v47  ;;  %v540_v50 = vld [vmem:[%s3572_s1 + $0x88] sm:$0xff]  ;;  %v541_v51 = vld [vmem:[%s3572_s1 + $0x90] sm:$0xff] }
  0x3c   : > { %570 = vst [vmem:[#allocation2 + $0x78] sm:$0xff] %v538_v48  ;;  %571 = vst [vmem:[#allocation2 + $0x80] sm:$0xff] %v539_v49  ;;  %v542_v52 = vld [vmem:[%s3572_s1 + $0x98] sm:$0xff]  ;;  %v543_v53 = vld [vmem:[%s3572_s1 + $0xa0] sm:$0xff] }
  0x3d   : > { %572 = vst [vmem:[#allocation2 + $0x88] sm:$0xff] %v540_v50  ;;  %573 = vst [vmem:[#allocation2 + $0x90] sm:$0xff] %v541_v51  ;;  %v544_v54 = vld [vmem:[%s3572_s1 + $0xa8] sm:$0xff]  ;;  %v545_v55 = vld [vmem:[%s3572_s1 + $0xb0] sm:$0xff] }
  0x3e   : > { %574 = vst [vmem:[#allocation2 + $0x98] sm:$0xff] %v542_v52  ;;  %575 = vst [vmem:[#allocation2 + $0xa0] sm:$0xff] %v543_v53  ;;  %v546_v56 = vld [vmem:[%s3572_s1 + $0xb8] sm:$0xff]  ;;  %v547_v57 = vld [vmem:[%s3572_s1 + $0xc0] sm:$0xff] }
  0x3f   : > { %576 = vst [vmem:[#allocation2 + $0xa8] sm:$0xff] %v544_v54  ;;  %577 = vst [vmem:[#allocation2 + $0xb0] sm:$0xff] %v545_v55  ;;  %v548_v58 = vld [vmem:[%s3572_s1 + $0xc8] sm:$0xff]  ;;  %v549_v59 = vld [vmem:[%s3572_s1 + $0xd0] sm:$0xff] }
  0x40   : > { %578 = vst [vmem:[#allocation2 + $0xb8] sm:$0xff] %v546_v56  ;;  %579 = vst [vmem:[#allocation2 + $0xc0] sm:$0xff] %v547_v57  ;;  %v550_v60 = vld [vmem:[%s3572_s1 + $0xd8] sm:$0xff]  ;;  %v551_v61 = vld [vmem:[%s3572_s1 + $0xe0] sm:$0xff] }
  0x41   : > { %580 = vst [vmem:[#allocation2 + $0xc8] sm:$0xff] %v548_v58  ;;  %581 = vst [vmem:[#allocation2 + $0xd0] sm:$0xff] %v549_v59  ;;  %v552_v62 = vld [vmem:[%s3572_s1 + $0xe8] sm:$0xff]  ;;  %v553_v63 = vld [vmem:[%s3572_s1 + $0xf0] sm:$0xff] }
  0x42   : > { %582 = vst [vmem:[#allocation2 + $0xd8] sm:$0xff] %v550_v60  ;;  %583 = vst [vmem:[#allocation2 + $0xe0] sm:$0xff] %v551_v61  ;;  %v554_v0 = vld [vmem:[%s3572_s1 + $0xf8] sm:$0xff] }
  0x43   : > { %584 = vst [vmem:[#allocation2 + $0xe8] sm:$0xff] %v552_v62  ;;  %585 = vst [vmem:[#allocation2 + $0xf0] sm:$0xff] %v553_v63 }
  0x44   : > { %586 = vst [vmem:[#allocation2 + $0xf8] sm:$0xff] %v554_v0 }
  0x45 PF: > { %p2068_p13 = scmp.ne.s32.totalorder %s2775_s15, 0 }
  0x47   : > { %590 = sbr.rel (%p2068_p13) target bundleno = 93 (0x5d), region = 106 }
  0x4c   : > { %v2794_v1 = vmov 0.0  }
  0x4d   : > { %591 = vst [vmem:[#allocation3 + $0xb0] sm:$0xff] %v2794_v1  ;;  %592 = vst [vmem:[#allocation3] sm:$0xff] %v2794_v1 }
  0x4e   : > { %593 = vst [vmem:[#allocation3 + $0xd8] sm:$0xff] %v2794_v1  ;;  %594 = vst [vmem:[#allocation3 + $0x18] sm:$0xff] %v2794_v1 }
  0x4f   : > { %595 = vst [vmem:[#allocation3 + $0x50] sm:$0xff] %v2794_v1  ;;  %596 = vst [vmem:[#allocation3 + $0x68] sm:$0xff] %v2794_v1 }
  0x50   : > { %597 = vst [vmem:[#allocation3 + $0x30] sm:$0xff] %v2794_v1  ;;  %598 = vst [vmem:[#allocation3 + $0x48] sm:$0xff] %v2794_v1 }
  0x51   : > { %599 = vst [vmem:[#allocation3 + $0x80] sm:$0xff] %v2794_v1  ;;  %600 = vst [vmem:[#allocation3 + $0x88] sm:$0xff] %v2794_v1 }
  0x52   : > { %601 = vst [vmem:[#allocation3 + $0xe8] sm:$0xff] %v2794_v1  ;;  %602 = vst [vmem:[#allocation3 + $0xb8] sm:$0xff] %v2794_v1 }
  0x53   : > { %603 = vst [vmem:[#allocation3 + $0x60] sm:$0xff] %v2794_v1  ;;  %604 = vst [vmem:[#allocation3 + $0xf0] sm:$0xff] %v2794_v1 }
  0x54   : > { %605 = vst [vmem:[#allocation3 + $0x8] sm:$0xff] %v2794_v1  ;;  %606 = vst [vmem:[#allocation3 + $0x78] sm:$0xff] %v2794_v1 }
  0x55   : > { %607 = vst [vmem:[#allocation3 + $0x38] sm:$0xff] %v2794_v1  ;;  %608 = vst [vmem:[#allocation3 + $0x58] sm:$0xff] %v2794_v1 }
  0x56   : > { %609 = vst [vmem:[#allocation3 + $0x40] sm:$0xff] %v2794_v1  ;;  %610 = vst [vmem:[#allocation3 + $0xc8] sm:$0xff] %v2794_v1 }
  0x57   : > { %611 = vst [vmem:[#allocation3 + $0xe0] sm:$0xff] %v2794_v1  ;;  %612 = vst [vmem:[#allocation3 + $0x90] sm:$0xff] %v2794_v1 }
  0x58   : > { %613 = vst [vmem:[#allocation3 + $0x70] sm:$0xff] %v2794_v1  ;;  %614 = vst [vmem:[#allocation3 + $0xc0] sm:$0xff] %v2794_v1 }
  0x59   : > { %615 = vst [vmem:[#allocation3 + $0xa8] sm:$0xff] %v2794_v1  ;;  %616 = vst [vmem:[#allocation3 + $0xd0] sm:$0xff] %v2794_v1 }
  0x5a   : > { %617 = vst [vmem:[#allocation3 + $0x10] sm:$0xff] %v2794_v1  ;;  %618 = vst [vmem:[#allocation3 + $0x28] sm:$0xff] %v2794_v1 }
  0x5b   : > { %619 = vst [vmem:[#allocation3 + $0xa0] sm:$0xff] %v2794_v1  ;;  %620 = vst [vmem:[#allocation3 + $0xf8] sm:$0xff] %v2794_v1 }
  0x5c   : > { %621 = vst [vmem:[#allocation3 + $0x20] sm:$0xff] %v2794_v1  ;;  %622 = vst [vmem:[#allocation3 + $0x98] sm:$0xff] %v2794_v1 }
  0x5d PF: > { %s2069_s11 = sshll.u32 %s2775_s15, 7  ;;  %v656_v2 = vld [vmem:[%s2986_s26] sm:$0xff]  ;;  %v657_v20 = vld [vmem:[%s2986_s26 + $0x8] sm:$0xff]  ;;  %v658_v22 = vld [vmem:[%s2986_s26 + $0x10] sm:$0xff]  ;;  %p2070_p0 = scmp.ne.s32.totalorder %s2775_s15, 1 }
  0x5e   : > { %v672_v3 = vld [vmem:[%s2986_s26 + $0x80] sm:$0xff]  ;;  %2326 = vmatprep.mubr.f32.mxu0 %v656_v2  ;;  %s3088_s12 = scalar_lea.vmem [#allocation2], %s2069_s11  ;;  %v673_v21 = vld [vmem:[%s2986_s26 + $0x88] sm:$0xff]  ;;  %v674_v23 = vld [vmem:[%s2986_s26 + $0x90] sm:$0xff]  ;;  %s2071_s28 = sshll.u32 (!%p2070_p0), %s2779_s16, 2 }
  0x5f   : > { %2350 = vmatprep.mubr.f32.mxu1 %v672_v3  ;;  %v704_v4 = vld [vmem:[%s3088_s12 + $0x78] sm:$0xff]  ;;  %v703_v5 = vld [vmem:[%s3088_s12 + $0x70] sm:$0xff]  ;;  %v702_v6 = vld [vmem:[%s3088_s12 + $0x68] sm:$0xff]  ;;  %s999_s11 = scalar_lea.vmem (!%p2070_p0), %s3575_s4, %s2071_s28  ;;  %p2074_p1 = scmp.ne.s32.totalorder (!%p2070_p0), %s2779_s16, 2 }
  0x60   : > { %2294 = vmatprep.subr.mxu0 %v704_v4  ;;  %2604 = vmatprep.subr.mxu1 %v704_v4  ;;  %v701_v7 = vld [vmem:[%s3088_s12 + $0x60] sm:$0xff]  ;;  %v700_v8 = vld [vmem:[%s3088_s12 + $0x58] sm:$0xff]  ;;  %v699_v9 = vld [vmem:[%s3088_s12 + $0x50] sm:$0xff] }
  0x61   : > { %2295 = vmatpush3.msra.mxu0 %v704_v4  ;;  %2620 = vmatpush3.msra.mxu1 %v704_v4  ;;  %v698_v10 = vld [vmem:[%s3088_s12 + $0x48] sm:$0xff]  ;;  %v697_v11 = vld [vmem:[%s3088_s12 + $0x40] sm:$0xff]  ;;  %v696_v12 = vld [vmem:[%s3088_s12 + $0x38] sm:$0xff] }
  0x62   : > { %2296 = vmatprep.subr.mxu0 %v703_v5  ;;  %2605 = vmatprep.subr.mxu1 %v703_v5  ;;  %v695_v13 = vld [vmem:[%s3088_s12 + $0x30] sm:$0xff]  ;;  %v694_v14 = vld [vmem:[%s3088_s12 + $0x28] sm:$0xff]  ;;  %v693_v15 = vld [vmem:[%s3088_s12 + $0x20] sm:$0xff] }
  0x63   : > { %2297 = vmatpush3.msra.mxu0 %v703_v5  ;;  %2621 = vmatpush3.msra.mxu1 %v703_v5  ;;  %v692_v16 = vld [vmem:[%s3088_s12 + $0x18] sm:$0xff]  ;;  %v691_v17 = vld [vmem:[%s3088_s12 + $0x10] sm:$0xff]  ;;  %v690_v18 = vld [vmem:[%s3088_s12 + $0x8] sm:$0xff] }
  0x64   : > { %2298 = vmatprep.subr.mxu0 %v702_v6  ;;  %2606 = vmatprep.subr.mxu1 %v702_v6  ;;  %v689_v19 = vld [vmem:[%s3088_s12] sm:$0xff]  ;;  %v661_v28 = vld [vmem:[%s2986_s26 + $0x28] sm:$0xff]  ;;  %v662_v30 = vld [vmem:[%s2986_s26 + $0x30] sm:$0xff] }
  0x65   : > { %2299 = vmatpush3.msra.mxu0 %v702_v6  ;;  %2622 = vmatpush3.msra.mxu1 %v702_v6  ;;  %v659_v24 = vld [vmem:[%s2986_s26 + $0x18] sm:$0xff]  ;;  %v660_v26 = vld [vmem:[%s2986_s26 + $0x20] sm:$0xff]  ;;  %v677_v29 = vld [vmem:[%s2986_s26 + $0xa8] sm:$0xff] }
  0x66   : > { %2300 = vmatprep.subr.mxu0 %v701_v7  ;;  %2607 = vmatprep.subr.mxu1 %v701_v7  ;;  %v675_v25 = vld [vmem:[%s2986_s26 + $0x98] sm:$0xff]  ;;  %v676_v27 = vld [vmem:[%s2986_s26 + $0xa0] sm:$0xff]  ;;  %v678_v31 = vld [vmem:[%s2986_s26 + $0xb0] sm:$0xff] }
  0x67   : > { %2301 = vmatpush3.msra.mxu0 %v701_v7  ;;  %2623 = vmatpush3.msra.mxu1 %v701_v7  ;;  %v663_v32 = vld [vmem:[%s2986_s26 + $0x38] sm:$0xff]  ;;  %v664_v34 = vld [vmem:[%s2986_s26 + $0x40] sm:$0xff]  ;;  %v665_v36 = vld [vmem:[%s2986_s26 + $0x48] sm:$0xff] }
  0x68   : > { %2302 = vmatprep.subr.mxu0 %v700_v8  ;;  %2608 = vmatprep.subr.mxu1 %v700_v8  ;;  %v679_v33 = vld [vmem:[%s2986_s26 + $0xb8] sm:$0xff]  ;;  %v680_v35 = vld [vmem:[%s2986_s26 + $0xc0] sm:$0xff]  ;;  %v681_v37 = vld [vmem:[%s2986_s26 + $0xc8] sm:$0xff] }
  0x69   : > { %2303 = vmatpush3.msra.mxu0 %v700_v8  ;;  %2624 = vmatpush3.msra.mxu1 %v700_v8  ;;  %v666_v38 = vld [vmem:[%s2986_s26 + $0x50] sm:$0xff]  ;;  %v667_v40 = vld [vmem:[%s2986_s26 + $0x58] sm:$0xff]  ;;  %v668_v42 = vld [vmem:[%s2986_s26 + $0x60] sm:$0xff] }
  0x6a   : > { %2304 = vmatprep.subr.mxu0 %v699_v9  ;;  %2609 = vmatprep.subr.mxu1 %v699_v9  ;;  %v682_v39 = vld [vmem:[%s2986_s26 + $0xd0] sm:$0xff]  ;;  %v683_v41 = vld [vmem:[%s2986_s26 + $0xd8] sm:$0xff]  ;;  %v684_v43 = vld [vmem:[%s2986_s26 + $0xe0] sm:$0xff] }
  0x6b   : > { %2305 = vmatpush3.msra.mxu0 %v699_v9  ;;  %2625 = vmatpush3.msra.mxu1 %v699_v9  ;;  %v669_v44 = vld [vmem:[%s2986_s26 + $0x68] sm:$0xff]  ;;  %v670_v46 = vld [vmem:[%s2986_s26 + $0x70] sm:$0xff]  ;;  %v671_v48 = vld [vmem:[%s2986_s26 + $0x78] sm:$0xff] }
  0x6c   : > { %2306 = vmatprep.subr.mxu0 %v698_v10  ;;  %2610 = vmatprep.subr.mxu1 %v698_v10  ;;  %v685_v45 = vld [vmem:[%s2986_s26 + $0xe8] sm:$0xff]  ;;  %v686_v47 = vld [vmem:[%s2986_s26 + $0xf0] sm:$0xff]  ;;  %v687_v49 = vld [vmem:[%s2986_s26 + $0xf8] sm:$0xff]  ;;  %s3138_s26 = sshll.u32 (!%p2070_p0), %s2779_s16, 7 }
  0x6d   : > { %2307 = vmatpush3.msra.mxu0 %v698_v10  ;;  %2626 = vmatpush3.msra.mxu1 %v698_v10  ;;  %v625_v50 = vld [vmem:[#allocation3] sm:$0xff]  ;;  %v641_v51 = vld [vmem:[#allocation3 + $0x58] sm:$0xff]  ;;  %v624_v54 = vld [vmem:[#allocation3 + $0xb0] sm:$0xff]  ;;  %s3144_s23 = scalar_lea.vmem (!%p2070_p0), %s3573_s2, %s3138_s26  ;;  %s3157_s27 = scalar_lea.vmem (!%p2070_p0), %s3574_s3, %s3138_s26 }
  0x6e   : > { %2308 = vmatprep.subr.mxu0 %v697_v11  ;;  %2611 = vmatprep.subr.mxu1 %v697_v11  ;;  %v640_v55 = vld [vmem:[#allocation3 + $0x38] sm:$0xff]  ;;  %v643_v61 = vld [vmem:[#allocation3 + $0xc8] sm:$0xff]  ;;  %v642_v3 = vld [vmem:[#allocation3 + $0x40] sm:$0xff]  ;;  %s3239_s15 = scalar_lea.vmem (!%p2070_p0), %s3577_s6, %s3138_s26 }
  0x6f   : > { %2309 = vmatpush3.msra.mxu0 %v697_v11  ;;  %2627 = vmatpush3.msra.mxu1 %v697_v11  ;;  %v627_v60 = vld [vmem:[#allocation3 + $0x18] sm:$0xff]  ;;  %v629_v8 = vld [vmem:[#allocation3 + $0x68] sm:$0xff]  ;;  %v645_v9 = vld [vmem:[#allocation3 + $0x90] sm:$0xff] }
  0x70   : > { %2310 = vmatprep.subr.mxu0 %v696_v12  ;;  %2612 = vmatprep.subr.mxu1 %v696_v12  ;;  %v626_v2 = vld [vmem:[#allocation3 + $0xd8] sm:$0xff] }
  0x71   : > { %2311 = vmatpush3.msra.mxu0 %v696_v12  ;;  %2628 = vmatpush3.msra.mxu1 %v696_v12 }
  0x72   : > { %2312 = vmatprep.subr.mxu0 %v695_v13  ;;  %2613 = vmatprep.subr.mxu1 %v695_v13 }
  0x73   : > { %2313 = vmatpush3.msra.mxu0 %v695_v13  ;;  %2629 = vmatpush3.msra.mxu1 %v695_v13 }
  0x74   : > { %2314 = vmatprep.subr.mxu0 %v694_v14  ;;  %2614 = vmatprep.subr.mxu1 %v694_v14 }
  0x75   : > { %2315 = vmatpush3.msra.mxu0 %v694_v14  ;;  %2630 = vmatpush3.msra.mxu1 %v694_v14  ;;  %v628_v14 = vld [vmem:[#allocation3 + $0x50] sm:$0xff] }
  0x76   : > { %2316 = vmatprep.subr.mxu0 %v693_v15  ;;  %2615 = vmatprep.subr.mxu1 %v693_v15 }
  0x77   : > { %2317 = vmatpush3.msra.mxu0 %v693_v15  ;;  %2631 = vmatpush3.msra.mxu1 %v693_v15  ;;  %v644_v15 = vld [vmem:[#allocation3 + $0xe0] sm:$0xff] }
  0x78   : > { %2318 = vmatprep.subr.mxu0 %v692_v16  ;;  %2616 = vmatprep.subr.mxu1 %v692_v16 }
  0x79   : > { %2319 = vmatpush3.msra.mxu0 %v692_v16  ;;  %2632 = vmatpush3.msra.mxu1 %v692_v16 }
  0x7a   : > { %2320 = vmatprep.subr.mxu0 %v691_v17  ;;  %2617 = vmatprep.subr.mxu1 %v691_v17 }
  0x7b   : > { %2321 = vmatpush3.msra.mxu0 %v691_v17  ;;  %2633 = vmatpush3.msra.mxu1 %v691_v17 }
  0x7c   : > { %2322 = vmatprep.subr.mxu0 %v690_v18  ;;  %2618 = vmatprep.subr.mxu1 %v690_v18 }
  0x7d   : > { %2323 = vmatpush3.msra.mxu0 %v690_v18  ;;  %2634 = vmatpush3.msra.mxu1 %v690_v18 }
  0x7e   : > { %2324 = vmatprep.subr.mxu0 %v689_v19  ;;  %2619 = vmatprep.subr.mxu1 %v689_v19 }
  0x7f   : > { %2325 = vmatpush3.msra.mxu0 %v689_v19  ;;  %2635 = vmatpush3.msra.mxu1 %v689_v19 }
  0x80   : > { %2327 = vmatmul.mubr.f32.vlgmr.msra.gmra.mxu0 %v657_v20  ;;  %2351 = vmatmul.mubr.f32.vlgmr.msra.gmra.mxu1 %v673_v21  ;;  %v631_v20 = vld [vmem:[#allocation3 + $0x48] sm:$0xff]  ;;  %v647_v21 = vld [vmem:[#allocation3 + $0xc0] sm:$0xff] }
  0x81   : > { %2329 = vmatprep.mubr.f32.mxu0 %v658_v22  ;;  %2353 = vmatprep.mubr.f32.mxu1 %v674_v23 }
  0x84   : > { %2330 = vmatmul.mubr.f32.gmra.mxu0 %v659_v24  ;;  %2354 = vmatmul.mubr.f32.gmra.mxu1 %v675_v25 }
  0x85   : > { %2332 = vmatprep.mubr.f32.mxu0 %v660_v26  ;;  %2356 = vmatprep.mubr.f32.mxu1 %v676_v27  ;;  %v630_v26 = vld [vmem:[#allocation3 + $0x30] sm:$0xff] }
  0x86   : > { %v646_v27 = vld [vmem:[#allocation3 + $0x70] sm:$0xff] }
  0x88   : > { %2333 = vmatmul.mubr.f32.gmra.mxu0 %v661_v28  ;;  %2357 = vmatmul.mubr.f32.gmra.mxu1 %v677_v29 }
  0x89   : > { %2335 = vmatprep.mubr.f32.mxu0 %v662_v30  ;;  %2359 = vmatprep.mubr.f32.mxu1 %v678_v31 }
  0x8c   : > { %2336 = vmatmul.mubr.f32.gmra.mxu0 %v663_v32  ;;  %2360 = vmatmul.mubr.f32.gmra.mxu1 %v679_v33  ;;  %v633_v32 = vld [vmem:[#allocation3 + $0x88] sm:$0xff]  ;;  %v649_v33 = vld [vmem:[#allocation3 + $0xd0] sm:$0xff] }
  0x8d   : > { %2338 = vmatprep.mubr.f32.mxu0 %v664_v34  ;;  %2362 = vmatprep.mubr.f32.mxu1 %v680_v35 }
  0x90   : > { %2339 = vmatmul.mubr.f32.gmra.mxu0 %v665_v36  ;;  %2363 = vmatmul.mubr.f32.gmra.mxu1 %v681_v37 }
  0x91   : > { %2341 = vmatprep.mubr.f32.mxu0 %v666_v38  ;;  %2365 = vmatprep.mubr.f32.mxu1 %v682_v39  ;;  %v632_v38 = vld [vmem:[#allocation3 + $0x80] sm:$0xff]  ;;  %v648_v39 = vld [vmem:[#allocation3 + $0xa8] sm:$0xff] }
  0x94   : > { %2342 = vmatmul.mubr.f32.gmra.mxu0 %v667_v40  ;;  %2366 = vmatmul.mubr.f32.gmra.mxu1 %v683_v41 }
  0x95   : > { %2344 = vmatprep.mubr.f32.mxu0 %v668_v42  ;;  %2368 = vmatprep.mubr.f32.mxu1 %v684_v43 }
  0x98   : > { %2345 = vmatmul.mubr.f32.gmra.mxu0 %v669_v44  ;;  %2369 = vmatmul.mubr.f32.gmra.mxu1 %v685_v45  ;;  %v635_v44 = vld [vmem:[#allocation3 + $0xb8] sm:$0xff]  ;;  %v651_v45 = vld [vmem:[#allocation3 + $0x28] sm:$0xff] }
  0x99   : > { %2347 = vmatprep.mubr.f32.mxu0 %v670_v46  ;;  %2371 = vmatprep.mubr.f32.mxu1 %v686_v47 }
  0x9c   : > { %2348 = vmatmul.mubr.f32.gmra.mxu0 %v671_v48  ;;  %2372 = vmatmul.mubr.f32.gmra.mxu1 %v687_v49 }
 0x140   : > { %v2328_v52 = vpop.f32.mrf.mxu0  ;;  %v2352_v53 = vpop.f32.mrf.mxu1 }
 0x141   : > { %v931_v56 = vadd.f32 %v2328_v52, %v625_v50  ;;  %v947_v57 = vadd.f32 %v2352_v53, %v641_v51  ;;  %v634_v50 = vld [vmem:[#allocation3 + $0xe8] sm:$0xff]  ;;  %v650_v51 = vld [vmem:[#allocation3 + $0x10] sm:$0xff] }
 0x142   : > { %v771_v58 = vpop.f32.mrf.mxu0  ;;  %v851_v59 = vpop.f32.mrf.mxu1 }
 0x143   : > { %963 = vst [vmem:[#allocation3] sm:$0xff] %v931_v56  ;;  %979 = vst [vmem:[#allocation3 + $0x58] sm:$0xff] %v947_v57  ;;  %v930_v62 = vadd.f32 %v771_v58, %v624_v54  ;;  %v946_v63 = vadd.f32 %v851_v59, %v640_v55  ;;  %v637_v56 = vld [vmem:[#allocation3 + $0xf0] sm:$0xff]  ;;  %v653_v57 = vld [vmem:[#allocation3 + $0xf8] sm:$0xff] }
 0x144   : > { %v2331_v0 = vpop.f32.mrf.mxu0  ;;  %v2355_v1 = vpop.f32.mrf.mxu1 }
 0x145   : > { %962 = vst [vmem:[#allocation3 + $0xb0] sm:$0xff] %v930_v62  ;;  %978 = vst [vmem:[#allocation3 + $0x38] sm:$0xff] %v946_v63  ;;  %v933_v4 = vadd.f32 %v2331_v0, %v627_v60  ;;  %v949_v5 = vadd.f32 %v2355_v1, %v643_v61  ;;  %v636_v62 = vld [vmem:[#allocation3 + $0x60] sm:$0xff] }
 0x146   : > { %v781_v6 = vpop.f32.mrf.mxu0  ;;  %v861_v7 = vpop.f32.mrf.mxu1  ;;  %v652_v63 = vld [vmem:[#allocation3 + $0xa0] sm:$0xff] }
 0x147   : > { %965 = vst [vmem:[#allocation3 + $0x18] sm:$0xff] %v933_v4  ;;  %981 = vst [vmem:[#allocation3 + $0xc8] sm:$0xff] %v949_v5  ;;  %v932_v10 = vadd.f32 %v781_v6, %v626_v2  ;;  %v948_v11 = vadd.f32 %v861_v7, %v642_v3  ;;  %v639_v4 = vld [vmem:[#allocation3 + $0x78] sm:$0xff] }
 0x148   : > { %v2334_v12 = vpop.f32.mrf.mxu0  ;;  %v2358_v13 = vpop.f32.mrf.mxu1  ;;  %v655_v5 = vld [vmem:[#allocation3 + $0x98] sm:$0xff] }
 0x149   : > { %964 = vst [vmem:[#allocation3 + $0xd8] sm:$0xff] %v932_v10  ;;  %980 = vst [vmem:[#allocation3 + $0x40] sm:$0xff] %v948_v11  ;;  %v935_v16 = vadd.f32 %v2334_v12, %v629_v8  ;;  %v951_v17 = vadd.f32 %v2358_v13, %v645_v9  ;;  %v638_v10 = vld [vmem:[#allocation3 + $0x8] sm:$0xff]  ;;  %v654_v11 = vld [vmem:[#allocation3 + $0x20] sm:$0xff] }
 0x14a   : > { %v791_v18 = vpop.f32.mrf.mxu0  ;;  %v871_v19 = vpop.f32.mrf.mxu1 }
 0x14b   : > { %967 = vst [vmem:[#allocation3 + $0x68] sm:$0xff] %v935_v16  ;;  %983 = vst [vmem:[#allocation3 + $0x90] sm:$0xff] %v951_v17  ;;  %v934_v22 = vadd.f32 %v791_v18, %v628_v14  ;;  %v950_v23 = vadd.f32 %v871_v19, %v644_v15 }
 0x14c   : > { %v2337_v24 = vpop.f32.mrf.mxu0  ;;  %v2361_v25 = vpop.f32.mrf.mxu1 }
 0x14d   : > { %966 = vst [vmem:[#allocation3 + $0x50] sm:$0xff] %v934_v22  ;;  %982 = vst [vmem:[#allocation3 + $0xe0] sm:$0xff] %v950_v23  ;;  %v937_v28 = vadd.f32 %v2337_v24, %v631_v20  ;;  %v953_v29 = vadd.f32 %v2361_v25, %v647_v21 }
 0x14e   : > { %v801_v30 = vpop.f32.mrf.mxu0  ;;  %v881_v31 = vpop.f32.mrf.mxu1 }
 0x14f   : > { %969 = vst [vmem:[#allocation3 + $0x48] sm:$0xff] %v937_v28  ;;  %985 = vst [vmem:[#allocation3 + $0xc0] sm:$0xff] %v953_v29  ;;  %v936_v34 = vadd.f32 %v801_v30, %v630_v26  ;;  %v952_v35 = vadd.f32 %v881_v31, %v646_v27 }
 0x150   : > { %v2340_v36 = vpop.f32.mrf.mxu0  ;;  %v2364_v37 = vpop.f32.mrf.mxu1 }
 0x151   : > { %968 = vst [vmem:[#allocation3 + $0x30] sm:$0xff] %v936_v34  ;;  %984 = vst [vmem:[#allocation3 + $0x70] sm:$0xff] %v952_v35  ;;  %v939_v40 = vadd.f32 %v2340_v36, %v633_v32  ;;  %v955_v41 = vadd.f32 %v2364_v37, %v649_v33 }
 0x152   : > { %v811_v42 = vpop.f32.mrf.mxu0  ;;  %v891_v43 = vpop.f32.mrf.mxu1 }
 0x153   : > { %971 = vst [vmem:[#allocation3 + $0x88] sm:$0xff] %v939_v40  ;;  %987 = vst [vmem:[#allocation3 + $0xd0] sm:$0xff] %v955_v41  ;;  %v938_v46 = vadd.f32 %v811_v42, %v632_v38  ;;  %v954_v47 = vadd.f32 %v891_v43, %v648_v39 }
 0x154   : > { %v2343_v48 = vpop.f32.mrf.mxu0  ;;  %v2367_v49 = vpop.f32.mrf.mxu1 }
 0x155   : > { %970 = vst [vmem:[#allocation3 + $0x80] sm:$0xff] %v938_v46  ;;  %986 = vst [vmem:[#allocation3 + $0xa8] sm:$0xff] %v954_v47  ;;  %v941_v52 = vadd.f32 %v2343_v48, %v635_v44  ;;  %v957_v53 = vadd.f32 %v2367_v49, %v651_v45 }
 0x156   : > { %v821_v54 = vpop.f32.mrf.mxu0  ;;  %v901_v55 = vpop.f32.mrf.mxu1 }
 0x157   : > { %973 = vst [vmem:[#allocation3 + $0xb8] sm:$0xff] %v941_v52  ;;  %989 = vst [vmem:[#allocation3 + $0x28] sm:$0xff] %v957_v53  ;;  %v940_v58 = vadd.f32 %v821_v54, %v634_v50  ;;  %v956_v59 = vadd.f32 %v901_v55, %v650_v51 }
 0x158   : > { %v2346_v60 = vpop.f32.mrf.mxu0  ;;  %v2370_v61 = vpop.f32.mrf.mxu1 }
 0x159   : > { %972 = vst [vmem:[#allocation3 + $0xe8] sm:$0xff] %v940_v58  ;;  %988 = vst [vmem:[#allocation3 + $0x10] sm:$0xff] %v956_v59  ;;  %v943_v0 = vadd.f32 %v2346_v60, %v637_v56  ;;  %v959_v1 = vadd.f32 %v2370_v61, %v653_v57 }
 0x15a   : > { %v831_v2 = vpop.f32.mrf.mxu0  ;;  %v911_v3 = vpop.f32.mrf.mxu1 }
 0x15b   : > { %975 = vst [vmem:[#allocation3 + $0xf0] sm:$0xff] %v943_v0  ;;  %991 = vst [vmem:[#allocation3 + $0xf8] sm:$0xff] %v959_v1  ;;  %v942_v6 = vadd.f32 %v831_v2, %v636_v62  ;;  %v958_v7 = vadd.f32 %v911_v3, %v652_v63 }
 0x15c   : > { %v2349_v8 = vpop.f32.mrf.mxu0  ;;  %v2373_v9 = vpop.f32.mrf.mxu1 }
 0x15d   : > { %974 = vst [vmem:[#allocation3 + $0x60] sm:$0xff] %v942_v6  ;;  %990 = vst [vmem:[#allocation3 + $0xa0] sm:$0xff] %v958_v7  ;;  %v945_v12 = vadd.f32 %v2349_v8, %v639_v4  ;;  %v961_v13 = vadd.f32 %v2373_v9, %v655_v5  ;;  %997 = sbr.rel (%p2070_p0) target bundleno = 1816 (0x718), region = 110 }
 0x15e   : > { %v841_v14 = vpop.f32.mrf.mxu0  ;;  %v921_v15 = vpop.f32.mrf.mxu1 }
 0x15f   : > { %977 = vst [vmem:[#allocation3 + $0x78] sm:$0xff] %v945_v12  ;;  %993 = vst [vmem:[#allocation3 + $0x98] sm:$0xff] %v961_v13  ;;  %v944_v16 = vadd.f32 %v841_v14, %v638_v10  ;;  %v960_v17 = vadd.f32 %v921_v15, %v654_v11 }
 0x161   : > { %976 = vst [vmem:[#allocation3 + $0x8] sm:$0xff] %v944_v16  ;;  %992 = vst [vmem:[#allocation3 + $0x20] sm:$0xff] %v960_v17 }
 0x162   : > { %v1001_v18 = vld [vmem:[#allocation3 + $0xb0] sm:$0xff]  ;;  %v1050_v19 = vld [vmem:[%s3144_s23 + $0x78] sm:$0xff]  ;;  %v1048_v21 = vld [vmem:[%s3144_s23 + $0x68] sm:$0xff]  ;;  %vm2796_vm0 = vmmov 0  }
 0x163   : > { %2406 = vmatprep.mubr.f32.mxu0 %v1001_v18  ;;  %v1049_v20 = vld [vmem:[%s3144_s23 + $0x70] sm:$0xff]  ;;  %2374 = vmatprep.subr.mxu0 %v1050_v19  ;;  %v1047_v22 = vld [vmem:[%s3144_s23 + $0x60] sm:$0xff]  ;;  %v1046_v23 = vld [vmem:[%s3144_s23 + $0x58] sm:$0xff]  ;;  %v1051_v18 = vlaneseq }
 0x164   : > { %2375 = vmatpush3.msra.mxu0 %v1050_v19  ;;  %v1045_v24 = vld [vmem:[%s3144_s23 + $0x50] sm:$0xff]  ;;  %v1044_v25 = vld [vmem:[%s3144_s23 + $0x48] sm:$0xff]  ;;  %v1043_v26 = vld [vmem:[%s3144_s23 + $0x40] sm:$0xff] }
 0x165   : > { %2376 = vmatprep.subr.mxu0 %v1049_v20  ;;  %v1042_v27 = vld [vmem:[%s3144_s23 + $0x38] sm:$0xff]  ;;  %v1327_v29 = vld [vmem:[%s3157_s27 + $0x70] sm:$0xff]  ;;  %v1326_v31 = vld [vmem:[%s3157_s27 + $0x68] sm:$0xff]  ;;  %v3185_v19 = vshrl.u32 %v1051_v18, 7 }
 0x166   : > { %2377 = vmatpush3.msra.mxu0 %v1049_v20  ;;  %v1328_v28 = vld [vmem:[%s3157_s27 + $0x78] sm:$0xff]  ;;  %v1041_v30 = vld [vmem:[%s3144_s23 + $0x30] sm:$0xff]  ;;  %v1040_v32 = vld [vmem:[%s3144_s23 + $0x28] sm:$0xff] }
 0x167   : > { %2378 = vmatprep.subr.mxu0 %v1048_v21  ;;  %2454 = vmatprep.subr.mxu1 %v1328_v28  ;;  %v1325_v33 = vld [vmem:[%s3157_s27 + $0x60] sm:$0xff]  ;;  %v1324_v35 = vld [vmem:[%s3157_s27 + $0x58] sm:$0xff]  ;;  %v1323_v37 = vld [vmem:[%s3157_s27 + $0x50] sm:$0xff]  ;;  %v1053_v20 = vsub.s32 0, %v3185_v19 }
 0x168   : > { %2379 = vmatpush3.msra.mxu0 %v1048_v21  ;;  %2455 = vmatpush3.msra.mxu1 %v1328_v28  ;;  %v1039_v34 = vld [vmem:[%s3144_s23 + $0x20] sm:$0xff]  ;;  %v1038_v36 = vld [vmem:[%s3144_s23 + $0x18] sm:$0xff]  ;;  %v1037_v38 = vld [vmem:[%s3144_s23 + $0x10] sm:$0xff] }
 0x169   : > { %2380 = vmatprep.subr.mxu0 %v1047_v22  ;;  %2456 = vmatprep.subr.mxu1 %v1327_v29  ;;  %v1322_v39 = vld [vmem:[%s3157_s27 + $0x48] sm:$0xff]  ;;  %v1321_v41 = vld [vmem:[%s3157_s27 + $0x40] sm:$0xff]  ;;  %v1320_v43 = vld [vmem:[%s3157_s27 + $0x38] sm:$0xff] }
 0x16a   : > { %2381 = vmatpush3.msra.mxu0 %v1047_v22  ;;  %2457 = vmatpush3.msra.mxu1 %v1327_v29  ;;  %v1036_v40 = vld [vmem:[%s3144_s23 + $0x8] sm:$0xff]  ;;  %v1035_v42 = vld [vmem:[%s3144_s23] sm:$0xff]  ;;  %v1319_v45 = vld [vmem:[%s3157_s27 + $0x30] sm:$0xff] }
 0x16b   : > { %2382 = vmatprep.subr.mxu0 %v1046_v23  ;;  %2458 = vmatprep.subr.mxu1 %v1326_v31  ;;  %v1002_v44 = vld [vmem:[#allocation3] sm:$0xff]  ;;  %v1003_v46 = vld [vmem:[#allocation3 + $0xd8] sm:$0xff]  ;;  %v1318_v47 = vld [vmem:[%s3157_s27 + $0x28] sm:$0xff] }
 0x16c   : > { %2383 = vmatpush3.msra.mxu0 %v1046_v23  ;;  %2459 = vmatpush3.msra.mxu1 %v1326_v31  ;;  %v1004_v48 = vld [vmem:[#allocation3 + $0x18] sm:$0xff]  ;;  %v1317_v49 = vld [vmem:[%s3157_s27 + $0x20] sm:$0xff]  ;;  %v1005_v50 = vld [vmem:[#allocation3 + $0x50] sm:$0xff] }
 0x16d   : > { %2384 = vmatprep.subr.mxu0 %v1045_v24  ;;  %2460 = vmatprep.subr.mxu1 %v1325_v33  ;;  %v1006_v51 = vld [vmem:[#allocation3 + $0x68] sm:$0xff]  ;;  %v1007_v52 = vld [vmem:[#allocation3 + $0x30] sm:$0xff]  ;;  %v1009_v54 = vld [vmem:[#allocation3 + $0x80] sm:$0xff] }
 0x16e   : > { %2385 = vmatpush3.msra.mxu0 %v1045_v24  ;;  %2461 = vmatpush3.msra.mxu1 %v1325_v33  ;;  %v1008_v53 = vld [vmem:[#allocation3 + $0x48] sm:$0xff]  ;;  %v1012_v57 = vld [vmem:[#allocation3 + $0xb8] sm:$0xff]  ;;  %v1013_v58 = vld [vmem:[#allocation3 + $0x60] sm:$0xff] }
 0x16f   : > { %2386 = vmatprep.subr.mxu0 %v1044_v25  ;;  %2462 = vmatprep.subr.mxu1 %v1324_v35  ;;  %v1010_v55 = vld [vmem:[#allocation3 + $0x88] sm:$0xff]  ;;  %v1014_v59 = vld [vmem:[#allocation3 + $0xf0] sm:$0xff]  ;;  %v1016_v61 = vld [vmem:[#allocation3 + $0x78] sm:$0xff] }
 0x170   : > { %2387 = vmatpush3.msra.mxu0 %v1044_v25  ;;  %2463 = vmatpush3.msra.mxu1 %v1324_v35  ;;  %v1011_v56 = vld [vmem:[#allocation3 + $0xe8] sm:$0xff]  ;;  %v1017_v62 = vld [vmem:[#allocation3 + $0x38] sm:$0xff]  ;;  %v1019_v0 = vld [vmem:[#allocation3 + $0x40] sm:$0xff] }
 0x171   : > { %2388 = vmatprep.subr.mxu0 %v1043_v26  ;;  %2464 = vmatprep.subr.mxu1 %v1323_v37  ;;  %v1015_v60 = vld [vmem:[#allocation3 + $0x8] sm:$0xff]  ;;  %v1018_v63 = vld [vmem:[#allocation3 + $0x58] sm:$0xff]  ;;  %v1021_v2 = vld [vmem:[#allocation3 + $0xe0] sm:$0xff] }
 0x172   : > { %2389 = vmatpush3.msra.mxu0 %v1043_v26  ;;  %2465 = vmatpush3.msra.mxu1 %v1323_v37  ;;  %v1020_v1 = vld [vmem:[#allocation3 + $0xc8] sm:$0xff]  ;;  %v1022_v3 = vld [vmem:[#allocation3 + $0x90] sm:$0xff]  ;;  %v1024_v5 = vld [vmem:[#allocation3 + $0xc0] sm:$0xff] }
 0x173   : > { %2390 = vmatprep.subr.mxu0 %v1042_v27  ;;  %2466 = vmatprep.subr.mxu1 %v1322_v39  ;;  %v1023_v4 = vld [vmem:[#allocation3 + $0x70] sm:$0xff]  ;;  %v1025_v6 = vld [vmem:[#allocation3 + $0xa8] sm:$0xff]  ;;  %v1029_v10 = vld [vmem:[#allocation3 + $0xa0] sm:$0xff] }
 0x174   : > { %2391 = vmatpush3.msra.mxu0 %v1042_v27  ;;  %2467 = vmatpush3.msra.mxu1 %v1322_v39  ;;  %v1026_v7 = vld [vmem:[#allocation3 + $0xd0] sm:$0xff]  ;;  %v1028_v9 = vld [vmem:[#allocation3 + $0x28] sm:$0xff]  ;;  %v1030_v11 = vld [vmem:[#allocation3 + $0xf8] sm:$0xff] }
 0x175   : > { %2392 = vmatprep.subr.mxu0 %v1041_v30  ;;  %2468 = vmatprep.subr.mxu1 %v1321_v41  ;;  %v1027_v8 = vld [vmem:[#allocation3 + $0x10] sm:$0xff]  ;;  %v1031_v12 = vld [vmem:[#allocation3 + $0x20] sm:$0xff]  ;;  %v1032_v13 = vld [vmem:[#allocation3 + $0x98] sm:$0xff] }
 0x176   : > { %2393 = vmatpush3.msra.mxu0 %v1041_v30  ;;  %2469 = vmatpush3.msra.mxu1 %v1321_v41  ;;  %v1316_v14 = vld [vmem:[%s3157_s27 + $0x18] sm:$0xff]  ;;  %v1315_v15 = vld [vmem:[%s3157_s27 + $0x10] sm:$0xff]  ;;  %v1314_v16 = vld [vmem:[%s3157_s27 + $0x8] sm:$0xff] }
 0x177   : > { %2394 = vmatprep.subr.mxu0 %v1040_v32  ;;  %2470 = vmatprep.subr.mxu1 %v1320_v43  ;;  %v1313_v17 = vld [vmem:[%s3157_s27] sm:$0xff] }
 0x178   : > { %2395 = vmatpush3.msra.mxu0 %v1040_v32  ;;  %2471 = vmatpush3.msra.mxu1 %v1320_v43  ;;  %v3191_v21 = vld [vmem:[%s999_s11] sm:$0xf] }
 0x179   : > { %2396 = vmatprep.subr.mxu0 %v1039_v34  ;;  %2472 = vmatprep.subr.mxu1 %v1319_v45  ;;  %v3194_v22 = vrot.slane %v3191_v21, %v1053_v20 }
 0x17a   : > { %2397 = vmatpush3.msra.mxu0 %v1039_v34  ;;  %2473 = vmatpush3.msra.mxu1 %v1319_v45 }
 0x17b   : > { %2398 = vmatprep.subr.mxu0 %v1038_v36  ;;  %2474 = vmatprep.subr.mxu1 %v1318_v47 }
 0x17c   : > { %2399 = vmatpush3.msra.mxu0 %v1038_v36  ;;  %2475 = vmatpush3.msra.mxu1 %v1318_v47 }
 0x17d   : > { %2400 = vmatprep.subr.mxu0 %v1037_v38  ;;  %2476 = vmatprep.subr.mxu1 %v1317_v49 }
 0x17e   : > { %2401 = vmatpush3.msra.mxu0 %v1037_v38  ;;  %2477 = vmatpush3.msra.mxu1 %v1317_v49 }
 0x17f   : > { %2402 = vmatprep.subr.mxu0 %v1036_v40  ;;  %2478 = vmatprep.subr.mxu1 %v1316_v14 }
 0x180   : > { %2403 = vmatpush3.msra.mxu0 %v1036_v40  ;;  %2479 = vmatpush3.msra.mxu1 %v1316_v14 }
 0x181   : > { %2404 = vmatprep.subr.mxu0 %v1035_v42  ;;  %2480 = vmatprep.subr.mxu1 %v1315_v15 }
 0x182   : > { %2405 = vmatpush3.msra.mxu0 %v1035_v42  ;;  %2481 = vmatpush3.msra.mxu1 %v1315_v15 }
 0x183   : > { %2407 = vmatmul.mubr.f32.vlgmr.msra.gmra.mxu0 %v1002_v44  ;;  %2482 = vmatprep.subr.mxu1 %v1314_v16 }
 0x184   : > { %2409 = vmatprep.mubr.f32.mxu0 %v1003_v46  ;;  %2483 = vmatpush3.msra.mxu1 %v1314_v16 }
 0x185   : > { %2484 = vmatprep.subr.mxu1 %v1313_v17 }
 0x186   : > { %2485 = vmatpush3.msra.mxu1 %v1313_v17 }
 0x187   : > { %2410 = vmatmul.mubr.f32.gmra.mxu0 %v1004_v48 }
 0x188   : > { %2412 = vmatprep.mubr.f32.mxu0 %v1005_v50 }
 0x18b   : > { %2413 = vmatmul.mubr.f32.gmra.mxu0 %v1006_v51 }
 0x18c   : > { %2415 = vmatprep.mubr.f32.mxu0 %v1007_v52 }
 0x18f   : > { %2416 = vmatmul.mubr.f32.gmra.mxu0 %v1008_v53 }
 0x190   : > { %2418 = vmatprep.mubr.f32.mxu0 %v1009_v54 }
 0x193   : > { %2419 = vmatmul.mubr.f32.gmra.mxu0 %v1010_v55 }
 0x194   : > { %2421 = vmatprep.mubr.f32.mxu0 %v1011_v56 }
 0x197   : > { %2422 = vmatmul.mubr.f32.gmra.mxu0 %v1012_v57 }
 0x198   : > { %2424 = vmatprep.mubr.f32.mxu0 %v1013_v58 }
 0x19b   : > { %2425 = vmatmul.mubr.f32.gmra.mxu0 %v1014_v59 }
 0x19c   : > { %2427 = vmatprep.mubr.f32.mxu0 %v1015_v60 }
 0x19f   : > { %2428 = vmatmul.mubr.f32.gmra.mxu0 %v1016_v61 }
 0x1a0   : > { %2430 = vmatprep.mubr.f32.mxu0 %v1017_v62 }
 0x1a3   : > { %2431 = vmatmul.mubr.f32.gmra.mxu0 %v1018_v63 }
 0x1a4   : > { %2433 = vmatprep.mubr.f32.mxu0 %v1019_v0 }
 0x1a7   : > { %2434 = vmatmul.mubr.f32.gmra.mxu0 %v1020_v1 }
 0x1a8   : > { %2436 = vmatprep.mubr.f32.mxu0 %v1021_v2 }
 0x1ab   : > { %2437 = vmatmul.mubr.f32.gmra.mxu0 %v1022_v3 }
 0x1ac   : > { %2439 = vmatprep.mubr.f32.mxu0 %v1023_v4 }
 0x1af   : > { %2440 = vmatmul.mubr.f32.gmra.mxu0 %v1024_v5 }
 0x1b0   : > { %2442 = vmatprep.mubr.f32.mxu0 %v1025_v6 }
 0x1b3   : > { %2443 = vmatmul.mubr.f32.gmra.mxu0 %v1026_v7 }
 0x1b4   : > { %2445 = vmatprep.mubr.f32.mxu0 %v1027_v8 }
 0x1b7   : > { %2446 = vmatmul.mubr.f32.gmra.mxu0 %v1028_v9 }
 0x1b8   : > { %2448 = vmatprep.mubr.f32.mxu0 %v1029_v10 }
 0x1bb   : > { %2449 = vmatmul.mubr.f32.gmra.mxu0 %v1030_v11 }
 0x1bc   : > { %2451 = vmatprep.mubr.f32.mxu0 %v1031_v12 }
 0x1bf   : > { %2452 = vmatmul.mubr.f32.gmra.mxu0 %v1032_v13 }
 0x243   : > { %v2408_v23 = vpop.f32.mrf.mxu0 }
 0x244   : > { %v1127_v24 = vadd.f32 %v2408_v23, %v3194_v22 }
 0x245   : > { %v1121_v25 = vpop.f32.mrf.mxu0 }
 0x246   : > { %v1122_v26 = vadd.f32 %v1121_v25, %v3194_v22  ;;  %v1281_v29 = vmax.f32 %v1127_v24, 0.0 }
 0x247   : > { %v2411_v27 = vpop.f32.mrf.mxu0 }
 0x248   : > { %v1280_v28 = vmax.f32 %v1122_v26, 0.0  ;;  %v1137_v30 = vadd.f32 %v2411_v27, %v3194_v22 }
 0x249   : > { %v1131_v31 = vpop.f32.mrf.mxu0 }
 0x24a   : > { %v1132_v32 = vadd.f32 %v1131_v31, %v3194_v22  ;;  %2486 = vmatprep.mubr.f32.mxu1 %v1280_v28  ;;  %v1283_v35 = vmax.f32 %v1137_v30, 0.0 }
 0x24b   : > { %v2414_v33 = vpop.f32.mrf.mxu0  ;;  %2487 = vmatmul.mubr.f32.vlgmr.msra.gmra.mxu1 %v1281_v29 }
 0x24c   : > { %v1282_v34 = vmax.f32 %v1132_v32, 0.0  ;;  %v1147_v36 = vadd.f32 %v2414_v33, %v3194_v22 }
 0x24d   : > { %v1141_v37 = vpop.f32.mrf.mxu0 }
 0x24e   : > { %v1142_v38 = vadd.f32 %v1141_v37, %v3194_v22  ;;  %2489 = vmatprep.mubr.f32.mxu1 %v1282_v34  ;;  %v1285_v41 = vmax.f32 %v1147_v36, 0.0 }
 0x24f   : > { %v2417_v39 = vpop.f32.mrf.mxu0  ;;  %2490 = vmatmul.mubr.f32.gmra.mxu1 %v1283_v35 }
 0x250   : > { %v1284_v40 = vmax.f32 %v1142_v38, 0.0  ;;  %v1157_v42 = vadd.f32 %v2417_v39, %v3194_v22 }
 0x251   : > { %v1151_v43 = vpop.f32.mrf.mxu0 }
 0x252   : > { %v1152_v44 = vadd.f32 %v1151_v43, %v3194_v22  ;;  %2492 = vmatprep.mubr.f32.mxu1 %v1284_v40  ;;  %v1287_v47 = vmax.f32 %v1157_v42, 0.0 }
 0x253   : > { %v2420_v45 = vpop.f32.mrf.mxu0  ;;  %2493 = vmatmul.mubr.f32.gmra.mxu1 %v1285_v41 }
 0x254   : > { %v1286_v46 = vmax.f32 %v1152_v44, 0.0  ;;  %v1167_v48 = vadd.f32 %v2420_v45, %v3194_v22 }
 0x255   : > { %v1161_v49 = vpop.f32.mrf.mxu0 }
 0x256   : > { %v1162_v50 = vadd.f32 %v1161_v49, %v3194_v22  ;;  %2495 = vmatprep.mubr.f32.mxu1 %v1286_v46  ;;  %v1289_v53 = vmax.f32 %v1167_v48, 0.0 }
 0x257   : > { %v2423_v51 = vpop.f32.mrf.mxu0  ;;  %2496 = vmatmul.mubr.f32.gmra.mxu1 %v1287_v47 }
 0x258   : > { %v1288_v52 = vmax.f32 %v1162_v50, 0.0  ;;  %v1177_v54 = vadd.f32 %v2423_v51, %v3194_v22 }
 0x259   : > { %v1171_v55 = vpop.f32.mrf.mxu0 }
 0x25a   : > { %v1172_v56 = vadd.f32 %v1171_v55, %v3194_v22  ;;  %2498 = vmatprep.mubr.f32.mxu1 %v1288_v52  ;;  %v1291_v59 = vmax.f32 %v1177_v54, 0.0 }
 0x25b   : > { %v2426_v57 = vpop.f32.mrf.mxu0  ;;  %2499 = vmatmul.mubr.f32.gmra.mxu1 %v1289_v53 }
 0x25c   : > { %v1290_v58 = vmax.f32 %v1172_v56, 0.0  ;;  %v1187_v60 = vadd.f32 %v2426_v57, %v3194_v22 }
 0x25d   : > { %v1181_v61 = vpop.f32.mrf.mxu0 }
 0x25e   : > { %v1182_v62 = vadd.f32 %v1181_v61, %v3194_v22  ;;  %2501 = vmatprep.mubr.f32.mxu1 %v1290_v58  ;;  %v1293_v1 = vmax.f32 %v1187_v60, 0.0  ;;  %v3231_v58 = vld.sshfl [vmem:[%s3576_s5] sm:$0x33 pattern:$0x76325410]  ;;  %v1793_v60 = vld [vmem:[%s3239_s15 + $0x78] sm:$0xff] }
 0x25f   : > { %v2429_v63 = vpop.f32.mrf.mxu0  ;;  %2502 = vmatmul.mubr.f32.gmra.mxu1 %v1291_v59  ;;  %v1703_v59 = vcombine.high %v3231_v58, %v3231_v58  ;;  %v1792_v61 = vld [vmem:[%s3239_s15 + $0x70] sm:$0xff] }
 0x260   : > { %v1292_v0 = vmax.f32 %v1182_v62, 0.0  ;;  %v1197_v2 = vadd.f32 %v2429_v63, %v3194_v22  ;;  %v1791_v62 = vld [vmem:[%s3239_s15 + $0x68] sm:$0xff]  ;;  %v1790_v63 = vld [vmem:[%s3239_s15 + $0x60] sm:$0xff] }
 0x261   : > { %v1191_v3 = vpop.f32.mrf.mxu0  ;;  %1770 = vmatprep.mubr.f32.mxu0 %v1703_v59 }
 0x262   : > { %v1192_v4 = vadd.f32 %v1191_v3, %v3194_v22  ;;  %2504 = vmatprep.mubr.f32.mxu1 %v1292_v0  ;;  %v1295_v7 = vmax.f32 %v1197_v2, 0.0  ;;  %v1789_v0 = vld [vmem:[%s3239_s15 + $0x58] sm:$0xff]  ;;  %v1787_v2 = vld [vmem:[%s3239_s15 + $0x48] sm:$0xff]  ;;  %v1786_v3 = vld [vmem:[%s3239_s15 + $0x40] sm:$0xff] }
 0x263   : > { %v2432_v5 = vpop.f32.mrf.mxu0  ;;  %2505 = vmatmul.mubr.f32.gmra.mxu1 %v1293_v1  ;;  %v1788_v1 = vld [vmem:[%s3239_s15 + $0x50] sm:$0xff] }
 0x264   : > { %v1294_v6 = vmax.f32 %v1192_v4, 0.0  ;;  %v1207_v8 = vadd.f32 %v2432_v5, %v3194_v22  ;;  %v1785_v4 = vld [vmem:[%s3239_s15 + $0x38] sm:$0xff]  ;;  %v1784_v5 = vld [vmem:[%s3239_s15 + $0x30] sm:$0xff] }
 0x265   : > { %v1201_v9 = vpop.f32.mrf.mxu0 }
 0x266   : > { %v1202_v10 = vadd.f32 %v1201_v9, %v3194_v22  ;;  %2507 = vmatprep.mubr.f32.mxu1 %v1294_v6  ;;  %v1297_v13 = vmax.f32 %v1207_v8, 0.0  ;;  %v1783_v6 = vld [vmem:[%s3239_s15 + $0x28] sm:$0xff]  ;;  %v1782_v8 = vld [vmem:[%s3239_s15 + $0x20] sm:$0xff]  ;;  %v1781_v9 = vld [vmem:[%s3239_s15 + $0x18] sm:$0xff] }
 0x267   : > { %v2435_v11 = vpop.f32.mrf.mxu0  ;;  %2508 = vmatmul.mubr.f32.gmra.mxu1 %v1295_v7  ;;  %v1331_v7 = vsub.s32 1, %v3185_v19 }
 0x268   : > { %v1296_v12 = vmax.f32 %v1202_v10, 0.0  ;;  %v1217_v14 = vadd.f32 %v2435_v11, %v3194_v22  ;;  %v1592_v11 = vsub.s32 2, %v3185_v19 }
 0x269   : > { %v1211_v15 = vpop.f32.mrf.mxu0  ;;  %v3268_v10 = vrot.slane %v3191_v21, %v1331_v7 }
 0x26a   : > { %v1212_v16 = vadd.f32 %v1211_v15, %v3194_v22  ;;  %2510 = vmatprep.mubr.f32.mxu1 %v1296_v12  ;;  %v1299_v20 = vmax.f32 %v1217_v14, 0.0  ;;  %v1780_v12 = vld [vmem:[%s3239_s15 + $0x10] sm:$0xff] }
 0x26b   : > { %v2438_v17 = vpop.f32.mrf.mxu0  ;;  %2511 = vmatmul.mubr.f32.gmra.mxu1 %v1297_v13  ;;  %v1628_v13 = vsub.s32 3, %v3185_v19 }
 0x26c   : > { %v1298_v18 = vmax.f32 %v1212_v16, 0.0  ;;  %v1227_v23 = vadd.f32 %v2438_v17, %v3194_v22  ;;  %v3277_v16 = vrot.slane %v3191_v21, %v1592_v11 }
 0x26d   : > { %v1221_v24 = vpop.f32.mrf.mxu0 }
 0x26e   : > { %v1222_v25 = vadd.f32 %v1221_v24, %v3194_v22  ;;  %2513 = vmatprep.mubr.f32.mxu1 %v1298_v18  ;;  %v1301_v28 = vmax.f32 %v1227_v23, 0.0 }
 0x26f   : > { %v2441_v26 = vpop.f32.mrf.mxu0  ;;  %2514 = vmatmul.mubr.f32.gmra.mxu1 %v1299_v20  ;;  %v3281_v20 = vrot.slane %v3191_v21, %v1628_v13 }
 0x270   : > { %v1300_v27 = vmax.f32 %v1222_v25, 0.0  ;;  %v1237_v29 = vadd.f32 %v2441_v26, %v3194_v22 }
 0x271   : > { %v1231_v30 = vpop.f32.mrf.mxu0 }
 0x272   : > { %v1232_v31 = vadd.f32 %v1231_v30, %v3194_v22  ;;  %2516 = vmatprep.mubr.f32.mxu1 %v1300_v27  ;;  %v1303_v34 = vmax.f32 %v1237_v29, 0.0 }
 0x273   : > { %v2444_v32 = vpop.f32.mrf.mxu0  ;;  %2517 = vmatmul.mubr.f32.gmra.mxu1 %v1301_v28 }
 0x274   : > { %v1302_v33 = vmax.f32 %v1232_v31, 0.0  ;;  %v1247_v35 = vadd.f32 %v2444_v32, %v3194_v22 }
 0x275   : > { %v1241_v36 = vpop.f32.mrf.mxu0 }
 0x276   : > { %v1242_v37 = vadd.f32 %v1241_v36, %v3194_v22  ;;  %2519 = vmatprep.mubr.f32.mxu1 %v1302_v33  ;;  %v1305_v40 = vmax.f32 %v1247_v35, 0.0 }
 0x277   : > { %v2447_v38 = vpop.f32.mrf.mxu0  ;;  %2520 = vmatmul.mubr.f32.gmra.mxu1 %v1303_v34 }
 0x278   : > { %v1304_v39 = vmax.f32 %v1242_v37, 0.0  ;;  %v1257_v41 = vadd.f32 %v2447_v38, %v3194_v22 }
 0x279   : > { %v1251_v42 = vpop.f32.mrf.mxu0 }
 0x27a   : > { %v1252_v43 = vadd.f32 %v1251_v42, %v3194_v22  ;;  %2522 = vmatprep.mubr.f32.mxu1 %v1304_v39  ;;  %v1307_v46 = vmax.f32 %v1257_v41, 0.0 }
 0x27b   : > { %v2450_v44 = vpop.f32.mrf.mxu0  ;;  %2523 = vmatmul.mubr.f32.gmra.mxu1 %v1305_v40 }
 0x27c   : > { %v1306_v45 = vmax.f32 %v1252_v43, 0.0  ;;  %v1267_v47 = vadd.f32 %v2450_v44, %v3194_v22 }
 0x27d   : > { %v1261_v48 = vpop.f32.mrf.mxu0 }
 0x27e   : > { %v1262_v49 = vadd.f32 %v1261_v48, %v3194_v22  ;;  %2525 = vmatprep.mubr.f32.mxu1 %v1306_v45  ;;  %v1309_v52 = vmax.f32 %v1267_v47, 0.0 }
 0x27f   : > { %v2453_v50 = vpop.f32.mrf.mxu0  ;;  %2526 = vmatmul.mubr.f32.gmra.mxu1 %v1307_v46 }
 0x280   : > { %v1308_v51 = vmax.f32 %v1262_v49, 0.0  ;;  %v1277_v53 = vadd.f32 %v2453_v50, %v3194_v22 }
 0x281   : > { %v1271_v54 = vpop.f32.mrf.mxu0 }
 0x282   : > { %v1272_v55 = vadd.f32 %v1271_v54, %v3194_v22  ;;  %2528 = vmatprep.mubr.f32.mxu1 %v1308_v51  ;;  %v1311_v57 = vmax.f32 %v1277_v53, 0.0  ;;  %v2795_v22 = vmov 0.0  }
 0x283   : > { %2529 = vmatmul.mubr.f32.gmra.mxu1 %v1309_v52  ;;  %2534 = vmatprep.subr.mxu1 %v2795_v22 }
 0x284   : > { %v1310_v56 = vmax.f32 %v1272_v55, 0.0  ;;  %2535 = vmatpush3.msra.mxu1 %v1793_v60 }
 0x285   : > { %2536 = vmatprep.subr.mxu1 %v2795_v22 }
 0x286   : > { %2531 = vmatprep.mubr.f32.mxu1 %v1310_v56  ;;  %2537 = vmatpush3.msra.mxu1 %v1792_v61 }
 0x287   : > { %2532 = vmatmul.mubr.f32.gmra.mxu1 %v1311_v57  ;;  %2538 = vmatprep.subr.mxu1 %v2795_v22 }
 0x288   : > { %2539 = vmatpush3.msra.mxu1 %v1791_v62  ;;  %2566 = vmatprep.mubr.msk.f32.mxu1 %vm2796_vm0, %v2795_v22 }
 0x289   : > { %2540 = vmatprep.subr.mxu1 %v2795_v22 }
 0x28a   : > { %2541 = vmatpush3.msra.mxu1 %v1790_v63 }
 0x28b   : > { %2542 = vmatprep.subr.mxu1 %v2795_v22 }
 0x28c   : > { %2543 = vmatpush3.msra.mxu1 %v1789_v0 }
 0x28d   : > { %2544 = vmatprep.subr.mxu1 %v2795_v22 }
 0x28e   : > { %2545 = vmatpush3.msra.mxu1 %v1788_v1 }
 0x28f   : > { %2546 = vmatprep.subr.mxu1 %v2795_v22 }
 0x290   : > { %2547 = vmatpush3.msra.mxu1 %v1787_v2 }
 0x291   : > { %2548 = vmatprep.subr.mxu1 %v2795_v22 }
 0x292   : > { %2549 = vmatpush3.msra.mxu1 %v1786_v3 }
 0x293   : > { %2550 = vmatprep.subr.mxu1 %v2795_v22 }
 0x294   : > { %2551 = vmatpush3.msra.mxu1 %v1785_v4 }
 0x295   : > { %2552 = vmatprep.subr.mxu1 %v2795_v22 }
 0x296   : > { %2553 = vmatpush3.msra.mxu1 %v1784_v5 }
 0x297   : > { %2554 = vmatprep.subr.mxu1 %v2795_v22 }
 0x298   : > { %2555 = vmatpush3.msra.mxu1 %v1783_v6 }
 0x299   : > { %2556 = vmatprep.subr.mxu1 %v2795_v22 }
 0x29a   : > { %2557 = vmatpush3.msra.mxu1 %v1782_v8 }
 0x29b   : > { %2558 = vmatprep.subr.mxu1 %v2795_v22 }
 0x29c   : > { %2559 = vmatpush3.msra.mxu1 %v1781_v9 }
 0x29d   : > { %2560 = vmatprep.subr.mxu1 %v2795_v22 }
 0x29e   : > { %2561 = vmatpush3.msra.mxu1 %v1780_v12 }
 0x29f   : > { %2562 = vmatprep.subr.mxu1 %v2795_v22 }
 0x30b   : > { %v2488_v14 = vpop.f32.mrf.mxu1 }
 0x30c   : > { %v1405_v15 = vadd.f32 %v2488_v14, %v3268_v10 }
 0x30d   : > { %v1399_v17 = vpop.f32.mrf.mxu1 }
 0x30e   : > { %v1559_v18 = vmax.f32 %v1405_v15, 0.0  ;;  %v1400_v23 = vadd.f32 %v1399_v17, %v3268_v10 }
 0x30f   : > { %v2491_v19 = vpop.f32.mrf.mxu1 }
 0x310   : > { %v1595_v24 = vmul.f32 %v3277_v16, %v1559_v18  ;;  %v1558_v25 = vmax.f32 %v1400_v23, 0.0  ;;  %v1415_v26 = vadd.f32 %v2491_v19, %v3268_v10 }
 0x311   : > { %v1409_v27 = vpop.f32.mrf.mxu1 }
 0x312   : > { %v3287_v28 = vadd.f32 %v3281_v20, %v1595_v24  ;;  %v1594_v29 = vmul.f32 %v3277_v16, %v1558_v25  ;;  %v1561_v30 = vmax.f32 %v1415_v26, 0.0  ;;  %v1410_v31 = vadd.f32 %v1409_v27, %v3268_v10 }
 0x313   : > { %v2494_v32 = vpop.f32.mrf.mxu1 }
 0x314   : > { %1663 = vst [vmem:[#allocation2 + $0x8] sm:$0xff] %v3287_v28  ;;  %v3293_v21 = vadd.f32 %v3281_v20, %v1594_v29  ;;  %v1597_v33 = vmul.f32 %v3277_v16, %v1561_v30  ;;  %v1560_v34 = vmax.f32 %v1410_v31, 0.0  ;;  %v1425_v35 = vadd.f32 %v2494_v32, %v3268_v10 }
 0x315   : > { %v1419_v36 = vpop.f32.mrf.mxu1 }
 0x316   : > { %1662 = vst [vmem:[#allocation2] sm:$0xff] %v3293_v21  ;;  %v3299_v37 = vadd.f32 %v3281_v20, %v1597_v33  ;;  %v1596_v38 = vmul.f32 %v3277_v16, %v1560_v34  ;;  %v1563_v39 = vmax.f32 %v1425_v35, 0.0  ;;  %v1420_v40 = vadd.f32 %v1419_v36, %v3268_v10 }
 0x317   : > { %v2497_v41 = vpop.f32.mrf.mxu1 }
 0x318   : > { %1665 = vst [vmem:[#allocation2 + $0x18] sm:$0xff] %v3299_v37  ;;  %v3305_v42 = vadd.f32 %v3281_v20, %v1596_v38  ;;  %v1599_v43 = vmul.f32 %v3277_v16, %v1563_v39  ;;  %v1562_v44 = vmax.f32 %v1420_v40, 0.0  ;;  %v1435_v45 = vadd.f32 %v2497_v41, %v3268_v10 }
 0x319   : > { %v1429_v46 = vpop.f32.mrf.mxu1 }
 0x31a   : > { %1664 = vst [vmem:[#allocation2 + $0x10] sm:$0xff] %v3305_v42  ;;  %v3311_v47 = vadd.f32 %v3281_v20, %v1599_v43  ;;  %v1598_v48 = vmul.f32 %v3277_v16, %v1562_v44  ;;  %v1565_v49 = vmax.f32 %v1435_v45, 0.0  ;;  %v1430_v50 = vadd.f32 %v1429_v46, %v3268_v10 }
 0x31b   : > { %v2500_v51 = vpop.f32.mrf.mxu1 }
 0x31c   : > { %1667 = vst [vmem:[#allocation2 + $0x28] sm:$0xff] %v3311_v47  ;;  %v3317_v52 = vadd.f32 %v3281_v20, %v1598_v48  ;;  %v1601_v53 = vmul.f32 %v3277_v16, %v1565_v49  ;;  %v1564_v54 = vmax.f32 %v1430_v50, 0.0  ;;  %v1445_v55 = vadd.f32 %v2500_v51, %v3268_v10 }
 0x31d   : > { %v1439_v56 = vpop.f32.mrf.mxu1 }
 0x31e   : > { %1666 = vst [vmem:[#allocation2 + $0x20] sm:$0xff] %v3317_v52  ;;  %v3323_v57 = vadd.f32 %v3281_v20, %v1601_v53  ;;  %v1600_v59 = vmul.f32 %v3277_v16, %v1564_v54  ;;  %v1567_v60 = vmax.f32 %v1445_v55, 0.0  ;;  %v1440_v61 = vadd.f32 %v1439_v56, %v3268_v10 }
 0x31f   : > { %v2503_v62 = vpop.f32.mrf.mxu1 }
 0x320   : > { %1669 = vst [vmem:[#allocation2 + $0x38] sm:$0xff] %v3323_v57  ;;  %v3329_v63 = vadd.f32 %v3281_v20, %v1600_v59  ;;  %v1603_v0 = vmul.f32 %v3277_v16, %v1567_v60  ;;  %v1566_v1 = vmax.f32 %v1440_v61, 0.0  ;;  %v1455_v2 = vadd.f32 %v2503_v62, %v3268_v10 }
 0x321   : > { %v1449_v3 = vpop.f32.mrf.mxu1 }
 0x322   : > { %1668 = vst [vmem:[#allocation2 + $0x30] sm:$0xff] %v3329_v63  ;;  %v3335_v4 = vadd.f32 %v3281_v20, %v1603_v0  ;;  %v1602_v5 = vmul.f32 %v3277_v16, %v1566_v1  ;;  %v1569_v6 = vmax.f32 %v1455_v2, 0.0  ;;  %v1450_v7 = vadd.f32 %v1449_v3, %v3268_v10 }
 0x323   : > { %v2506_v8 = vpop.f32.mrf.mxu1 }
 0x324   : > { %1671 = vst [vmem:[#allocation2 + $0x48] sm:$0xff] %v3335_v4  ;;  %v3341_v9 = vadd.f32 %v3281_v20, %v1602_v5  ;;  %v1605_v11 = vmul.f32 %v3277_v16, %v1569_v6  ;;  %v1568_v12 = vmax.f32 %v1450_v7, 0.0  ;;  %v1465_v13 = vadd.f32 %v2506_v8, %v3268_v10 }
 0x325   : > { %v1459_v14 = vpop.f32.mrf.mxu1 }
 0x326   : > { %1670 = vst [vmem:[#allocation2 + $0x40] sm:$0xff] %v3341_v9  ;;  %v3347_v15 = vadd.f32 %v3281_v20, %v1605_v11  ;;  %v1604_v17 = vmul.f32 %v3277_v16, %v1568_v12  ;;  %v1571_v18 = vmax.f32 %v1465_v13, 0.0  ;;  %v1460_v23 = vadd.f32 %v1459_v14, %v3268_v10 }
 0x327   : > { %v2509_v19 = vpop.f32.mrf.mxu1 }
 0x328   : > { %1673 = vst [vmem:[#allocation2 + $0x58] sm:$0xff] %v3347_v15  ;;  %v3353_v24 = vadd.f32 %v3281_v20, %v1604_v17  ;;  %v1607_v25 = vmul.f32 %v3277_v16, %v1571_v18  ;;  %v1570_v26 = vmax.f32 %v1460_v23, 0.0  ;;  %v1475_v27 = vadd.f32 %v2509_v19, %v3268_v10 }
 0x329   : > { %v1469_v29 = vpop.f32.mrf.mxu1 }
 0x32a   : > { %1672 = vst [vmem:[#allocation2 + $0x50] sm:$0xff] %v3353_v24  ;;  %v3359_v30 = vadd.f32 %v3281_v20, %v1607_v25  ;;  %v1606_v31 = vmul.f32 %v3277_v16, %v1570_v26  ;;  %v1573_v32 = vmax.f32 %v1475_v27, 0.0  ;;  %v1470_v33 = vadd.f32 %v1469_v29, %v3268_v10 }
 0x32b   : > { %v2512_v34 = vpop.f32.mrf.mxu1 }
 0x32c   : > { %1675 = vst [vmem:[#allocation2 + $0x68] sm:$0xff] %v3359_v30  ;;  %v3365_v35 = vadd.f32 %v3281_v20, %v1606_v31  ;;  %v1609_v36 = vmul.f32 %v3277_v16, %v1573_v32  ;;  %v1572_v38 = vmax.f32 %v1470_v33, 0.0  ;;  %v1485_v39 = vadd.f32 %v2512_v34, %v3268_v10 }
 0x32d   : > { %v1479_v40 = vpop.f32.mrf.mxu1 }
 0x32e   : > { %1674 = vst [vmem:[#allocation2 + $0x60] sm:$0xff] %v3365_v35  ;;  %v3371_v41 = vadd.f32 %v3281_v20, %v1609_v36  ;;  %v1608_v43 = vmul.f32 %v3277_v16, %v1572_v38  ;;  %v1575_v44 = vmax.f32 %v1485_v39, 0.0  ;;  %v1480_v45 = vadd.f32 %v1479_v40, %v3268_v10 }
 0x32f   : > { %v2515_v46 = vpop.f32.mrf.mxu1 }
 0x330   : > { %1677 = vst [vmem:[#allocation2 + $0x78] sm:$0xff] %v3371_v41  ;;  %v3377_v48 = vadd.f32 %v3281_v20, %v1608_v43  ;;  %v1611_v49 = vmul.f32 %v3277_v16, %v1575_v44  ;;  %v1574_v50 = vmax.f32 %v1480_v45, 0.0  ;;  %v1495_v51 = vadd.f32 %v2515_v46, %v3268_v10 }
 0x331   : > { %v1489_v53 = vpop.f32.mrf.mxu1 }
 0x332   : > { %1676 = vst [vmem:[#allocation2 + $0x70] sm:$0xff] %v3377_v48  ;;  %v1610_v54 = vmul.f32 %v3277_v16, %v1574_v50  ;;  %v1577_v55 = vmax.f32 %v1495_v51, 0.0  ;;  %v1490_v56 = vadd.f32 %v1489_v53, %v3268_v10  ;;  %v3385_v59 = vadd.f32 %v3281_v20, %v1611_v49 }
 0x333   : > { %v2518_v60 = vpop.f32.mrf.mxu1 }
 0x334   : > { %v1613_v61 = vmul.f32 %v3277_v16, %v1577_v55  ;;  %v1576_v62 = vmax.f32 %v1490_v56, 0.0  ;;  %v1505_v0 = vadd.f32 %v2518_v60, %v3268_v10  ;;  %1679 = vst [vmem:[#allocation2 + $0x88] sm:$0xff] %v3385_v59  ;;  %v3391_v1 = vadd.f32 %v3281_v20, %v1610_v54 }
 0x335   : > { %v1499_v2 = vpop.f32.mrf.mxu1 }
 0x336   : > { %v1612_v3 = vmul.f32 %v3277_v16, %v1576_v62  ;;  %v1579_v5 = vmax.f32 %v1505_v0, 0.0  ;;  %v1500_v6 = vadd.f32 %v1499_v2, %v3268_v10  ;;  %v3396_v7 = vadd.f32 %v3281_v20, %v1613_v61  ;;  %1678 = vst [vmem:[#allocation2 + $0x80] sm:$0xff] %v3391_v1 }
 0x337   : > { %v2521_v8 = vpop.f32.mrf.mxu1 }
 0x338   : > { %v1615_v11 = vmul.f32 %v3277_v16, %v1579_v5  ;;  %v1578_v12 = vmax.f32 %v1500_v6, 0.0  ;;  %v1515_v13 = vadd.f32 %v2521_v8, %v3268_v10  ;;  %1681 = vst [vmem:[#allocation2 + $0x98] sm:$0xff] %v3396_v7  ;;  %v3403_v14 = vadd.f32 %v3281_v20, %v1612_v3 }
 0x339   : > { %v1509_v17 = vpop.f32.mrf.mxu1 }
 0x33a   : > { %v1614_v18 = vmul.f32 %v3277_v16, %v1578_v12  ;;  %v1581_v23 = vmax.f32 %v1515_v13, 0.0  ;;  %v1510_v19 = vadd.f32 %v1509_v17, %v3268_v10  ;;  %v3408_v25 = vadd.f32 %v3281_v20, %v1615_v11  ;;  %1680 = vst [vmem:[#allocation2 + $0x90] sm:$0xff] %v3403_v14 }
 0x33b   : > { %v2524_v26 = vpop.f32.mrf.mxu1 }
 0x33c   : > { %v1617_v27 = vmul.f32 %v3277_v16, %v1581_v23  ;;  %v1580_v29 = vmax.f32 %v1510_v19, 0.0  ;;  %v1525_v31 = vadd.f32 %v2524_v26, %v3268_v10  ;;  %1683 = vst [vmem:[#allocation2 + $0xa8] sm:$0xff] %v3408_v25  ;;  %v3415_v32 = vadd.f32 %v3281_v20, %v1614_v18 }
 0x33d   : > { %v1519_v33 = vpop.f32.mrf.mxu1 }
 0x33e   : > { %v1616_v34 = vmul.f32 %v3277_v16, %v1580_v29  ;;  %v1583_v36 = vmax.f32 %v1525_v31, 0.0  ;;  %v1520_v38 = vadd.f32 %v1519_v33, %v3268_v10  ;;  %v3420_v39 = vadd.f32 %v3281_v20, %v1617_v27  ;;  %1682 = vst [vmem:[#allocation2 + $0xa0] sm:$0xff] %v3415_v32 }
 0x33f   : > { %v2527_v40 = vpop.f32.mrf.mxu1 }
 0x340   : > { %v1619_v43 = vmul.f32 %v3277_v16, %v1583_v36  ;;  %v1582_v44 = vmax.f32 %v1520_v38, 0.0  ;;  %v1535_v45 = vadd.f32 %v2527_v40, %v3268_v10  ;;  %1685 = vst [vmem:[#allocation2 + $0xb8] sm:$0xff] %v3420_v39  ;;  %v1652_v46 = vadd.f32 %v3281_v20, %v1616_v34 }
 0x341   : > { %v1529_v49 = vpop.f32.mrf.mxu1 }
 0x342   : > { %v1618_v50 = vmul.f32 %v3277_v16, %v1582_v44  ;;  %v1585_v51 = vmax.f32 %v1535_v45, 0.0  ;;  %v1530_v53 = vadd.f32 %v1529_v49, %v3268_v10  ;;  %v1655_v54 = vadd.f32 %v3281_v20, %v1619_v43  ;;  %1684 = vst [vmem:[#allocation2 + $0xb0] sm:$0xff] %v1652_v46 }
 0x343   : > { %v2530_v55 = vpop.f32.mrf.mxu1 }
 0x344   : > { %v1621_v56 = vmul.f32 %v3277_v16, %v1585_v51  ;;  %v1584_v60 = vmax.f32 %v1530_v53, 0.0  ;;  %v1545_v61 = vadd.f32 %v2530_v55, %v3268_v10  ;;  %1687 = vst [vmem:[#allocation2 + $0xc8] sm:$0xff] %v1655_v54  ;;  %v1654_v62 = vadd.f32 %v3281_v20, %v1618_v50 }
 0x345   : > { %v1539_v0 = vpop.f32.mrf.mxu1 }
 0x346   : > { %v1620_v2 = vmul.f32 %v3277_v16, %v1584_v60  ;;  %v1587_v3 = vmax.f32 %v1545_v61, 0.0  ;;  %v1540_v5 = vadd.f32 %v1539_v0, %v3268_v10  ;;  %v1657_v6 = vadd.f32 %v3281_v20, %v1621_v56  ;;  %1686 = vst [vmem:[#allocation2 + $0xc0] sm:$0xff] %v1654_v62 }
 0x347   : > { %v2533_v8 = vpop.f32.mrf.mxu1 }
 0x348   : > { %v1623_v11 = vmul.f32 %v3277_v16, %v1587_v3  ;;  %v1586_v12 = vmax.f32 %v1540_v5, 0.0  ;;  %v1555_v13 = vadd.f32 %v2533_v8, %v3268_v10  ;;  %1689 = vst [vmem:[#allocation2 + $0xd8] sm:$0xff] %v1657_v6  ;;  %v1656_v17 = vadd.f32 %v3281_v20, %v1620_v2 }
 0x349   : > { %v1549_v18 = vpop.f32.mrf.mxu1 }
 0x34a   : > { %v1622_v23 = vmul.f32 %v3277_v16, %v1586_v12  ;;  %v1589_v19 = vmax.f32 %v1555_v13, 0.0  ;;  %v1550_v26 = vadd.f32 %v1549_v18, %v3268_v10  ;;  %v1659_v27 = vadd.f32 %v3281_v20, %v1623_v11  ;;  %1688 = vst [vmem:[#allocation2 + $0xd0] sm:$0xff] %v1656_v17  ;;  %v1779_v10 = vld [vmem:[%s3239_s15 + $0x8] sm:$0xff] }
 0x34b   : > { %2563 = vmatpush3.msra.mxu1 %v1779_v10 }
 0x34c   : > { %v1625_v29 = vmul.f32 %v3277_v16, %v1589_v19  ;;  %v1588_v31 = vmax.f32 %v1550_v26, 0.0  ;;  %1691 = vst [vmem:[#allocation2 + $0xe8] sm:$0xff] %v1659_v27  ;;  %v1658_v33 = vadd.f32 %v3281_v20, %v1622_v23  ;;  %2564 = vmatprep.subr.mxu1 %v2795_v22 }
 0x34e   : > { %v1624_v34 = vmul.f32 %v3277_v16, %v1588_v31  ;;  %v1661_v36 = vadd.f32 %v3281_v20, %v1625_v29  ;;  %1690 = vst [vmem:[#allocation2 + $0xe0] sm:$0xff] %v1658_v33  ;;  %v1778_v16 = vld [vmem:[%s3239_s15] sm:$0xff] }
 0x34f   : > { %2565 = vmatpush3.msra.mxu1 %v1778_v16 }
 0x350   : > { %1693 = vst [vmem:[#allocation2 + $0xf8] sm:$0xff] %v1661_v36  ;;  %2225 = vmatprep.subr.mxu0 %v1661_v36  ;;  %v1660_v38 = vadd.f32 %v3281_v20, %v1624_v34 }
 0x351   : > { %2226 = vmatpush3.msra.mxu0 %v3371_v41 }
 0x352   : > { %1692 = vst [vmem:[#allocation2 + $0xf0] sm:$0xff] %v1660_v38  ;;  %2227 = vmatprep.subr.mxu0 %v1660_v38 }
 0x353   : > { %2228 = vmatpush3.msra.mxu0 %v3377_v48 }
 0x354   : > { %2229 = vmatprep.subr.mxu0 %v1659_v27 }
 0x355   : > { %2230 = vmatpush3.msra.mxu0 %v3359_v30 }
 0x356   : > { %2231 = vmatprep.subr.mxu0 %v1658_v33 }
 0x357   : > { %2232 = vmatpush3.msra.mxu0 %v3365_v35 }
 0x358   : > { %2233 = vmatprep.subr.mxu0 %v1657_v6 }
 0x359   : > { %2234 = vmatpush3.msra.mxu0 %v3347_v15 }
 0x35a   : > { %2235 = vmatprep.subr.mxu0 %v1656_v17 }
 0x35b   : > { %2236 = vmatpush3.msra.mxu0 %v3353_v24 }
 0x35c   : > { %2237 = vmatprep.subr.mxu0 %v1655_v54 }
 0x35d   : > { %2238 = vmatpush3.msra.mxu0 %v3335_v4 }
 0x35e   : > { %2239 = vmatprep.subr.mxu0 %v1654_v62 }
 0x35f   : > { %2240 = vmatpush3.msra.mxu0 %v3341_v9 }
 0x360   : > { %2241 = vmatprep.subr.mxu0 %v3420_v39 }
 0x361   : > { %2242 = vmatpush3.msra.mxu0 %v3323_v57 }
 0x362   : > { %2243 = vmatprep.subr.mxu0 %v1652_v46 }
 0x363   : > { %2244 = vmatpush3.msra.mxu0 %v3329_v63 }
 0x364   : > { %2245 = vmatprep.subr.mxu0 %v3408_v25 }
 0x365   : > { %2246 = vmatpush3.msra.mxu0 %v3311_v47 }
 0x366   : > { %2247 = vmatprep.subr.mxu0 %v3415_v32 }
 0x367   : > { %2248 = vmatpush3.msra.mxu0 %v3317_v52 }
 0x368   : > { %2249 = vmatprep.subr.mxu0 %v3396_v7 }
 0x369   : > { %2250 = vmatpush3.msra.mxu0 %v3299_v37 }
 0x36a   : > { %2251 = vmatprep.subr.mxu0 %v3403_v14 }
 0x36b   : > { %2252 = vmatpush3.msra.mxu0 %v3305_v42 }
 0x36c   : > { %2253 = vmatprep.subr.mxu0 %v3385_v59 }
 0x36d   : > { %2254 = vmatpush3.msra.mxu0 %v3287_v28  ;;  %v1776_v28 = vld [vmem:[#allocation4] sm:$0x3] }
 0x36e   : > { %2255 = vmatprep.subr.mxu0 %v3391_v1 }
 0x36f   : > { %2256 = vmatpush3.msra.mxu0 %v3293_v21 }
 0x370   : > { %1771 = vmatmul.mubr.f32.vlgmr.msra.gmra.mxu0 %v3231_v58 }
 0x430   : > { %v2257_v20 = vpop.f32.mrf.mxu0 }
 0x432   : > { %v2258_v37 = vpop.f32.mrf.mxu0 }
 0x433   : > { %v2259_v42 = vadd.f32 %v2258_v37, %v2257_v20 }
 0x435   : > { %2567 = vmatmul.mubr.f32.vlgmr.msra.gmra.mxu1 %v2259_v42 }
 0x4f4   : > { %1869 = sbr.rel (%p2074_p1) target bundleno = 1816 (0x718), region = 114 }
 0x4f5   : > { %v1860_v47 = vpop.f32.mrf.mxu1 }
 0x4f6   : > { %v1864_v52 = vadd.f32 %v1860_v47, %v1776_v28 }
 0x4f7   : > { %v2568_v57 = vpop.f32.mrf.mxu1 }
 0x4f8   : > { %1865 = vst [vmem:[#allocation4] sm:$0x3] %v1864_v52 }
 0x4f9   : > { %v1895_v58 = vld [vmem:[%s3579_s8 + $0x78] sm:$0xff]  ;;  %v2797_v21 = vmov 0.0   ;;  %v1894_v22 = vld [vmem:[%s3579_s8 + $0x70] sm:$0xff]  ;;  %vm2798_vm1 = vmmov 0   ;;  %v1893_v63 = vld [vmem:[%s3579_s8 + $0x68] sm:$0xff]  ;;  %vm1973_vm2 = vcmask 58368  }
 0x4fa   : > { %2569 = vmatprep.subr.mxu0 %v2797_v21  ;;  %2601 = vmatprep.mubr.msk.f32.mxu0 %vm2798_vm1, %v2797_v21  ;;  %v1892_v4 = vld [vmem:[%s3579_s8 + $0x60] sm:$0xff]  ;;  %v1891_v9 = vld [vmem:[%s3579_s8 + $0x58] sm:$0xff]  ;;  %v1890_v15 = vld [vmem:[%s3579_s8 + $0x50] sm:$0xff] }
 0x4fb   : > { %2570 = vmatpush3.msra.mxu0 %v1895_v58  ;;  %v1889_v24 = vld [vmem:[%s3579_s8 + $0x48] sm:$0xff]  ;;  %v1888_v30 = vld [vmem:[%s3579_s8 + $0x40] sm:$0xff]  ;;  %v1887_v35 = vld [vmem:[%s3579_s8 + $0x38] sm:$0xff] }
 0x4fc   : > { %2571 = vmatprep.subr.mxu0 %v2797_v21  ;;  %v1886_v41 = vld [vmem:[%s3579_s8 + $0x30] sm:$0xff]  ;;  %v1885_v48 = vld [vmem:[%s3579_s8 + $0x28] sm:$0xff]  ;;  %v1884_v59 = vld [vmem:[%s3579_s8 + $0x20] sm:$0xff] }
 0x4fd   : > { %2572 = vmatpush3.msra.mxu0 %v1894_v22  ;;  %v2075_v7 = vld [vmem:[%s3578_s7] ss:$0 sm:$0xff]  ;;  %v1883_v14 = vld [vmem:[%s3579_s8 + $0x18] sm:$0xff]  ;;  %v1882_v25 = vld [vmem:[%s3579_s8 + $0x10] sm:$0xff] }
 0x4fe   : > { %2573 = vmatprep.subr.mxu0 %v2797_v21  ;;  %v1881_v39 = vld [vmem:[%s3579_s8 + $0x8] sm:$0xff]  ;;  %v1880_v40 = vld [vmem:[%s3579_s8] sm:$0xff] }
 0x4ff   : > { %2574 = vmatpush3.msra.mxu0 %v1893_v63  ;;  %v1870_v1 = vld [vmem:[#allocation4] sm:$0x3] }
 0x500   : > { %2575 = vmatprep.subr.mxu0 %v2797_v21  ;;  %v1878_v32 = vadd.f32 %v2075_v7, %v1870_v1  ;;  %v2076_v44 = vld [vmem:[%s3580_s9] ss:$0 sm:$0xff] }
 0x501   : > { %2576 = vmatpush3.msra.mxu0 %v1892_v4 }
 0x502   : > { %2577 = vmatprep.subr.mxu0 %v2797_v21  ;;  %v1879_v43 = vmax.f32 %v1878_v32, 0.0 }
 0x503   : > { %2578 = vmatpush3.msra.mxu0 %v1891_v9 }
 0x504   : > { %2579 = vmatprep.subr.mxu0 %v2797_v21 }
 0x505   : > { %2580 = vmatpush3.msra.mxu0 %v1890_v15 }
 0x506   : > { %2581 = vmatprep.subr.mxu0 %v2797_v21 }
 0x507   : > { %2582 = vmatpush3.msra.mxu0 %v1889_v24 }
 0x508   : > { %2583 = vmatprep.subr.mxu0 %v2797_v21 }
 0x509   : > { %2584 = vmatpush3.msra.mxu0 %v1888_v30 }
 0x50a   : > { %2585 = vmatprep.subr.mxu0 %v2797_v21 }
 0x50b   : > { %2586 = vmatpush3.msra.mxu0 %v1887_v35 }
 0x50c   : > { %2587 = vmatprep.subr.mxu0 %v2797_v21 }
 0x50d   : > { %2588 = vmatpush3.msra.mxu0 %v1886_v41 }
 0x50e   : > { %2589 = vmatprep.subr.mxu0 %v2797_v21 }
 0x50f   : > { %2590 = vmatpush3.msra.mxu0 %v1885_v48 }
 0x510   : > { %2591 = vmatprep.subr.mxu0 %v2797_v21 }
 0x511   : > { %2592 = vmatpush3.msra.mxu0 %v1884_v59 }
 0x512   : > { %2593 = vmatprep.subr.mxu0 %v2797_v21 }
 0x513   : > { %2594 = vmatpush3.msra.mxu0 %v1883_v14 }
 0x514   : > { %2595 = vmatprep.subr.mxu0 %v2797_v21 }
 0x515   : > { %2596 = vmatpush3.msra.mxu0 %v1882_v25 }
 0x516   : > { %2597 = vmatprep.subr.mxu0 %v2797_v21 }
 0x517   : > { %2598 = vmatpush3.msra.mxu0 %v1881_v39 }
 0x518   : > { %2599 = vmatprep.subr.mxu0 %v2797_v21 }
 0x519   : > { %2600 = vmatpush3.msra.mxu0 %v1880_v40 }
 0x51a   : > { %2602 = vmatmul.mubr.f32.vlgmr.msra.gmra.mxu0 %v1879_v43 }
 0x5da   : > { %v1969_v45 = vpop.f32.mrf.mxu0 }
 0x5db   : > { %v1970_v46 = vadd.f32 %v2076_v44, %v1969_v45 }
 0x5dc   : > { %v2603_v49 = vpop.f32.mrf.mxu0 }
 0x5dd   : > { %v1974_v50 = vsel %vm1973_vm2, %v1970_v46, -inf }
 0x5de   : > { %1975 = vmax.xlane.f32.xlu0 %v1974_v50 }
 0x667   : > { %v1976_v51 = vpop.xlane.xlu0 %1975 }
 0x668   : > { %v1977_v53 = vsub.f32 %v1970_v46, %v1976_v51 }
 0x66a   : > { %v1978_v54 = vmul.f32 1.442695, %v1977_v53 }
 0x66c   : > { %2705 = vpow2.f32 %v1978_v54 }
 0x679   : > { %v2706_v55 = vpop.eup %2705 }
 0x67a   : > { %v1980_v56 = vsel %vm1973_vm2, %v2706_v55, 0.0 }
 0x67b   : > { %1981 = vadd.xlane.f32.xlu0 %v1980_v56 }
 0x704   : > { %v1982_v60 = vpop.xlane.xlu0 %1981 }
 0x705   : > { %2707 = vlog2.f32 %v1982_v60 }
 0x712   : > { %v2708_v61 = vpop.eup %2707 }
 0x713   : > { %v1984_v62 = vmul.f32 0.6931472, %v2708_v61 }
 0x715   : > { %v1985_v0 = vsub.f32 %v1977_v53, %v1984_v62 }
 0x717   : > { %1986 = vst.msk [vmem:[#allocation6] sm:$0x3] %vm1973_vm2, %v1985_v0 }
 0x718 PF: > { %s3582_s20 = sadd.s32 4294967295, %s2791_s19   ;;  %s2799_s15 = smov [#allocation6]  }
 0x719   : > { %p3535_p2 = scmp.eq.s32.totalorder %s3582_s20, 5  ;;  %s1994_s26 = sshll.u32 %s2799_s15, 4  ;;  %s1995_s26 = int_to_ptr.vmem [resolvable:$true] %s1994_s26 }
 0x71a   : > { %s2709_s24 = scalar_lea.vmem %s1995_s26, 32  ;;  %p2716_p6 = scmp.lt.s32.totalorder %s1995_s26, %s1995_s26 }
 0x71b   : > { %p2710_p3 = scmp.ne.s32.totalorder %s1995_s26, %s2709_s24  ;;  %p2717_p7 = scmp.lt.s32.totalorder %s2709_s24, %s2709_s24 }
 0x71d   : > { %p2711_p4 = pnand %p2710_p3, %p3535_p2  ;;  %p2718_p8 = por %p2717_p7, %p2716_p6 }
 0x71f   : > { %p2712_p5 = pneg %p2711_p4 }
 0x721   : > { %p2719_p9 = pnand %p2718_p8, %p2712_p5 }
 0x723   : > { %2722 = shalt.err (!%p2719_p9)
}
 0x724   : > { %2637 = dma.vmem_to_hbm [thread:$0]  (%p3535_p2), %s1995_s26, 32, %s3581_s10, [#allocation7]  }
 0x725   : > { %2762 = dma.done.wait (%p3535_p2), [#allocation7], 32  }
 0x726   : > { %2764 = vsyncadd (%p3535_p2), [#allocation7], 4294967264 }
 0x727 PF: > { %s21_s19 = sadd.s32 1, %s2791_s19   ;;  %s3584_s13 = smov %s2771_s14 }
 0x728   : > { %p18_p10 = scmp.ge.s32.totalorder %s21_s19, 8   ;;  %s3585_s14 = smov %s2905_s25 }
 0x729   : > { %s3586_s15 = smov %s2783_s17  ;;  %s3587_s16 = smov %s2787_s18 }
 0x72a   : > { %s3588_s17 = smov %s3591_s21  ;;  %s3589_s18 = smov %s3595_s22 }
 0x72b   :  { %20 = sbr.rel (!%p18_p10) target bundleno = 4 (0x4), region = 151 }
 0x730   :  { %2007 = vsyncpa [#allocation7], 1 }
 0x731   :  { %2009 = vsyncpa [#allocation7 + $0x1], 1 }

</bundles_post_ra>
